<compile_context>
chip_gen: v7x
topology: tpu7x:2x2x1
jax: 0.10.0
libtpu: 0.0.40
codegen_flags: <defaults>
</compile_context>

<pallas_src>
import functools

import jax
import jax.numpy as jnp
import numpy as np
from jax.experimental import pallas as pl
from jax.experimental.pallas import tpu as pltpu


def _pointfeat_global_kernel(x_ref, w1_ref, b1_ref, w2_ref, b2_ref, w3_ref,
                             o_ref, *, n_valid, block_n, c_in, tiles_per_split,
                             padded, use_vpu_layer1):
    """One (batch b, point-split s, point-tile n) step of the fused feature MLP."""
    s = pl.program_id(1)
    n = pl.program_id(2)

    x = x_ref[0]                                                # (block_n, c_pad) f32

    # ---- Layer 1: conv1(1x1) + folded bn1 + relu -------------------------------
    # K = c_in is tiny (3 by default): keep it off the MXU as unrolled VPU FMAs
    # that overlap with the layer-2/3 MXU work.  Falls back to a dot for large C.
    if use_vpu_layer1:
        h1 = x[:, 0:1] * w1_ref[0:1, :]
        for c in range(1, c_in):
            h1 = h1 + x[:, c:c + 1] * w1_ref[c:c + 1, :]
        h1 = h1 + b1_ref[...]
    else:
        h1 = jnp.dot(x, w1_ref[...], preferred_element_type=jnp.float32) + b1_ref[...]
    h1 = jnp.maximum(h1, 0.0).astype(jnp.bfloat16)

    # ---- Layer 2: conv2(1x1) + folded bn2 + relu (bf16 MXU, f32 accumulate) ----
    h2 = jnp.dot(h1, w2_ref[...], preferred_element_type=jnp.float32) + b2_ref[...]
    h2 = jnp.maximum(h2, 0.0).astype(jnp.bfloat16)

    # ---- Layer 3: conv3(1x1) + folded bn3 (bias b3 hoisted to the wrapper) -----
    h3 = jnp.dot(h2, w3_ref[...], preferred_element_type=jnp.float32)  # (block_n, 1024)

    def _reduce_store(h):
        tile_max = jnp.max(h, axis=0, keepdims=True)            # (1, 1024) lane-dense

        @pl.when(n == 0)
        def _init():
            o_ref[0] = tile_max

        @pl.when(n != 0)
        def _acc():
            o_ref[0] = jnp.maximum(o_ref[0], tile_max)

    if padded:
        # Only tiles that actually overlap the zero-padded tail pay for masking.
        global_tile = s * tiles_per_split + n
        needs_mask = (global_tile + 1) * block_n > n_valid

        @pl.when(needs_mask)
        def _masked():
            valid_in_tile = n_valid - global_tile * block_n      # may be <= 0
            row = jax.lax.broadcasted_iota(jnp.int32, (block_n, 1), 0)
            _reduce_store(jnp.where(row < valid_in_tile, h3, -jnp.inf))

        @pl.when(jnp.logical_not(needs_mask))
        def _full():
            _reduce_store(h3)
    else:
        _reduce_store(h3)


def _fold_conv_bn(w, b, gamma, beta, mean, var, eps, w_dtype):
    """Fold Conv1d(kernel=1) + eval-mode BatchNorm1d into (C_in, C_out) weight
    (cast to w_dtype) and (1, C_out) f32 bias, pre-transposed for x @ W."""
    w2 = jnp.reshape(w, (w.shape[0], w.shape[1]))        # (C_out, C_in)
    scale = gamma * jax.lax.rsqrt(var + eps)             # (C_out,)
    w_f = (w2 * scale[:, None]).T                        # (C_in, C_out)
    b_f = ((b - mean) * scale + beta)[None, :]           # (1, C_out)
    return w_f.astype(w_dtype), b_f.astype(jnp.float32)


def point_feat_net(x, params, *, block_n=512, n_parallel_splits=None, eps=1e-5):
    """PointFeatNet forward (global_feat=True, adj=None, weighted=None).

    x: (B, C_in, N) float32  ->  (global_feat (B, 1024), trans=None, trans_feat=None)
    """
    B, C_in, N = x.shape

    # Layer 1 stays f32 (runs on the VPU); layer 2/3 weights go bf16 for the MXU.
    w1, b1 = _fold_conv_bn(params['conv1_w'], params['conv1_b'],
                           params['bn1_g'], params['bn1_b'],
                           params['bn1_m'], params['bn1_v'], eps, jnp.float32)
    w2, b2 = _fold_conv_bn(params['conv2_w'], params['conv2_b'],
                           params['bn2_g'], params['bn2_b'],
                           params['bn2_m'], params['bn2_v'], eps, jnp.bfloat16)
    w3, b3 = _fold_conv_bn(params['conv3_w'], params['conv3_b'],
                           params['bn3_g'], params['bn3_b'],
                           params['bn3_m'], params['bn3_v'], eps, jnp.bfloat16)
    c_out = w3.shape[1]                                   # 1024

    # Channels-last layout; pad channel dim to 8 lanes for aligned loads.
    c_pad = max(8, ((C_in + 7) // 8) * 8)
    xt = jnp.transpose(x, (0, 2, 1)).astype(jnp.float32)   # (B, N, C_in)
    if c_pad != C_in:
        xt = jnp.pad(xt, ((0, 0), (0, 0), (0, c_pad - C_in)))
        w1 = jnp.pad(w1, ((0, c_pad - C_in), (0, 0)))

    # Point tiling: big tiles to fill the MXU + amortize per-step overhead.
    bn_tile = max(8, ((min(block_n, N) + 7) // 8) * 8)

    # Optional parallel split of the point axis so a small batch (B=1) can still
    # occupy both TensorCores on v7x; harmless elsewhere (single-TC chips just
    # iterate).  Per-split partial maxima are reduced in the wrapper.
    if n_parallel_splits is None:
        n_splits = 2 if B == 1 else 1
    else:
        n_splits = int(n_parallel_splits)
    n_splits = max(1, min(n_splits, pl.cdiv(N, bn_tile)))

    n_pad = pl.cdiv(N, bn_tile * n_splits) * bn_tile * n_splits
    if n_pad != N:
        xt = jnp.pad(xt, ((0, 0), (0, n_pad - N), (0, 0)))
    tiles_per_split = n_pad // (bn_tile * n_splits)

    kernel = functools.partial(
        _pointfeat_global_kernel,
        n_valid=N, block_n=bn_tile, c_in=C_in,
        tiles_per_split=tiles_per_split,
        padded=(n_pad != N), use_vpu_layer1=(C_in <= 8))

    flops = 2 * B * N * (C_in * 64 + 64 * 128 + 128 * c_out)
    bytes_accessed = int(xt.size * 4 + w1.size * 4 + b1.size * 4 + w2.size * 2
                         + b2.size * 4 + w3.size * 2 + B * n_splits * c_out * 4)

    # NOTE: constant-index weight BlockSpecs are fetched once by the pipeline;
    # W3 is only 256 KB in bf16 so no manual pl.ANY + make_async_copy is needed.
    out = pl.pallas_call(
        kernel,
        out_shape=jax.ShapeDtypeStruct((B * n_splits, 1, c_out), jnp.float32),
        grid=(B, n_splits, tiles_per_split),
        in_specs=[
            pl.BlockSpec((1, bn_tile, c_pad),
                         lambda b, s, n, T=tiles_per_split: (b, s * T + n, 0)),   # x tile
            pl.BlockSpec((c_pad, 64),  lambda b, s, n: (0, 0)),                   # W1 (f32)
            pl.BlockSpec((1, 64),      lambda b, s, n: (0, 0)),                   # b1
            pl.BlockSpec((64, 128),    lambda b, s, n: (0, 0)),                   # W2 (bf16)
            pl.BlockSpec((1, 128),     lambda b, s, n: (0, 0)),                   # b2
            pl.BlockSpec((128, c_out), lambda b, s, n: (0, 0)),                   # W3 (bf16)
        ],
        out_specs=pl.BlockSpec((1, 1, c_out),
                               lambda b, s, n, S=n_splits: (b * S + s, 0, 0)),
        compiler_params=pltpu.CompilerParams(
            dimension_semantics=("parallel", "parallel", "arbitrary")),
        cost_estimate=pl.CostEstimate(flops=flops, transcendentals=0,
                                      bytes_accessed=bytes_accessed),
    )(xt, w1, b1, w2, b2, w3)

    out = out.reshape(B, n_splits, c_out)
    # Reduce per-split partial maxima and add the hoisted conv3/bn3 bias once.
    global_feat = jnp.max(out, axis=1) + b3                 # (B, 1024)
    return global_feat, None, None


def point_feat_net_reference(x, params, eps=1e-5):
    """Pure-JAX f32 reference mirroring the PyTorch forward (eval-mode BN)."""
    def conv_bn(h, w, b, g, bt, m, v):
        w2 = jnp.reshape(w, (w.shape[0], w.shape[1]))                    # (Cout, Cin)
        y = jnp.einsum('bcn,oc->bon', h, w2,
                       precision=jax.lax.Precision.HIGHEST) + b[None, :, None]
        y = ((y - m[None, :, None]) * jax.lax.rsqrt(v + eps)[None, :, None]
             * g[None, :, None] + bt[None, :, None])
        return y

    h = jax.nn.relu(conv_bn(x, params['conv1_w'], params['conv1_b'],
                            params['bn1_g'], params['bn1_b'],
                            params['bn1_m'], params['bn1_v']))
    h = jax.nn.relu(conv_bn(h, params['conv2_w'], params['conv2_b'],
                            params['bn2_g'], params['bn2_b'],
                            params['bn2_m'], params['bn2_v']))
    h = conv_bn(h, params['conv3_w'], params['conv3_b'],
                params['bn3_g'], params['bn3_b'],
                params['bn3_m'], params['bn3_v'])
    return jnp.max(h, axis=2)                                            # (B, 1024)


if __name__ == "__main__":
    B, C_IN, N = 2, 3, 260     # small shapes; hidden sizes 64/128/1024 fixed by the module

    key = jax.random.PRNGKey(0)
    (kx, kw1, kb1, kw2, kb2, kw3, kb3,
     kg1, kh1, km1, kv1, kg2, kh2, km2, kv2, kg3, kh3, km3, kv3) = jax.random.split(key, 19)

    x = jax.random.normal(kx, (B, C_IN, N), dtype=jnp.float32)

    params = {
        'conv1_w': 0.1 * jax.random.normal(kw1, (64, C_IN, 1), dtype=jnp.float32),
        'conv1_b': 0.1 * jax.random.normal(kb1, (64,), dtype=jnp.float32),
        'conv2_w': 0.1 * jax.random.normal(kw2, (128, 64, 1), dtype=jnp.float32),
        'conv2_b': 0.1 * jax.random.normal(kb2, (128,), dtype=jnp.float32),
        'conv3_w': 0.1 * jax.random.normal(kw3, (1024, 128, 1), dtype=jnp.float32),
        'conv3_b': 0.1 * jax.random.normal(kb3, (1024,), dtype=jnp.float32),

        'bn1_g': 1.0 + 0.1 * jax.random.normal(kg1, (64,), dtype=jnp.float32),
        'bn1_b': 0.1 * jax.random.normal(kh1, (64,), dtype=jnp.float32),
        'bn1_m': 0.1 * jax.random.normal(km1, (64,), dtype=jnp.float32),
        'bn1_v': jax.random.uniform(kv1, (64,), jnp.float32, 0.5, 1.5),

        'bn2_g': 1.0 + 0.1 * jax.random.normal(kg2, (128,), dtype=jnp.float32),
        'bn2_b': 0.1 * jax.random.normal(kh2, (128,), dtype=jnp.float32),
        'bn2_m': 0.1 * jax.random.normal(km2, (128,), dtype=jnp.float32),
        'bn2_v': jax.random.uniform(kv2, (128,), jnp.float32, 0.5, 1.5),

        'bn3_g': 1.0 + 0.1 * jax.random.normal(kg3, (1024,), dtype=jnp.float32),
        'bn3_b': 0.1 * jax.random.normal(kh3, (1024,), dtype=jnp.float32),
        'bn3_m': 0.1 * jax.random.normal(km3, (1024,), dtype=jnp.float32),
        'bn3_v': jax.random.uniform(kv3, (1024,), jnp.float32, 0.5, 1.5),
    }

    # Default path: B=2, single point-split, one 264-row tile with 4 padded rows.
    global_feat, trans, trans_feat = point_feat_net(x, params)
    global_feat = jax.block_until_ready(global_feat)
    ref = point_feat_net_reference(x, params)
    # bf16 MXU operands with f32 accumulation vs. the pure-f32 reference.
    np.testing.assert_allclose(np.asarray(global_feat), np.asarray(ref),
                               rtol=2e-2, atol=2e-2)
    assert trans is None and trans_feat is None

    # Small-batch path (v7x): B=1 with the point axis split across 2 parallel
    # grid slots (2 tiles each), exercising multi-tile max accumulation + the
    # partial-tile padding mask + wrapper-side split reduction.
    x1 = x[:1, :, :250]
    gf1, t1, tf1 = point_feat_net(x1, params, block_n=64, n_parallel_splits=2)
    gf1 = jax.block_until_ready(gf1)
    ref1 = point_feat_net_reference(x1, params)
    np.testing.assert_allclose(np.asarray(gf1), np.asarray(ref1),
                               rtol=2e-2, atol=2e-2)
    assert t1 is None and tf1 is None

    print("KERNEL_OK")
</pallas_src>

<mosaic_0001>
module attributes {stable_mosaic.version = 11 : i64} {
  func.func @_pointfeat_global_kernel(%arg0: i32, %arg1: i32, %arg2: i32, %arg3: memref<1x264x8xf32, #tpu.memory_space<vmem>>, %arg4: memref<8x64xf32, #tpu.memory_space<vmem>>, %arg5: memref<1x64xf32, #tpu.memory_space<vmem>>, %arg6: memref<64x128xbf16, #tpu.memory_space<vmem>>, %arg7: memref<1x128xf32, #tpu.memory_space<vmem>>, %arg8: memref<128x1024xbf16, #tpu.memory_space<vmem>>, %arg9: memref<1x1x1024xf32, #tpu.memory_space<vmem>>) attributes {dimension_semantics = [#tpu.dimension_semantics<parallel>, #tpu.dimension_semantics<parallel>, #tpu.dimension_semantics<arbitrary>], iteration_bounds = array<i64: 2, 1, 1>, scalar_prefetch = 0 : i64, scratch_operands = 0 : i64, tpu.core_type = #tpu.core_type<tc>, window_params = [{transform_indices = @transform_0, window_bounds = array<i64: 1, 264, 8>}, {pipeline_mode = #tpu.pipeline_mode<synchronous>, transform_indices = @transform_1, window_bounds = array<i64: 8, 64>}, {pipeline_mode = #tpu.pipeline_mode<synchronous>, transform_indices = @transform_2, window_bounds = array<i64: 1, 64>}, {pipeline_mode = #tpu.pipeline_mode<synchronous>, transform_indices = @transform_3, window_bounds = array<i64: 64, 128>}, {pipeline_mode = #tpu.pipeline_mode<synchronous>, transform_indices = @transform_4, window_bounds = array<i64: 1, 128>}, {pipeline_mode = #tpu.pipeline_mode<synchronous>, transform_indices = @transform_5, window_bounds = array<i64: 128, 1024>}, {transform_indices = @transform_6, window_bounds = array<i64: 1, 1, 1024>}]} {
    %c0 = arith.constant 0 : index
    %c0_0 = arith.constant 0 : index
    %c0_1 = arith.constant 0 : index
    %0 = vector.load %arg3[%c0, %c0_0, %c0_1] : memref<1x264x8xf32, #tpu.memory_space<vmem>>, vector<1x264x8xf32>
    %1 = vector.shape_cast %0 : vector<1x264x8xf32> to vector<264x8xf32>
    %2 = vector.extract_strided_slice %1 {offsets = [0, 0], sizes = [264, 1], strides = [1, 1]} : vector<264x8xf32> to vector<264x1xf32>
    %c0_2 = arith.constant 0 : index
    %c0_3 = arith.constant 0 : index
    %3 = vector.load %arg4[%c0_2, %c0_3] : memref<8x64xf32, #tpu.memory_space<vmem>>, vector<1x64xf32>
    %4 = vector.broadcast %2 : vector<264x1xf32> to vector<264x64xf32>
    %5 = vector.broadcast %3 : vector<1x64xf32> to vector<264x64xf32>
    %6 = arith.mulf %4, %5 : vector<264x64xf32>
    %7 = vector.extract_strided_slice %1 {offsets = [0, 1], sizes = [264, 1], strides = [1, 1]} : vector<264x8xf32> to vector<264x1xf32>
    %c1 = arith.constant 1 : index
    %c0_4 = arith.constant 0 : index
    %8 = vector.load %arg4[%c1, %c0_4] : memref<8x64xf32, #tpu.memory_space<vmem>>, vector<1x64xf32>
    %9 = vector.broadcast %7 : vector<264x1xf32> to vector<264x64xf32>
    %10 = vector.broadcast %8 : vector<1x64xf32> to vector<264x64xf32>
    %11 = arith.mulf %9, %10 : vector<264x64xf32>
    %12 = arith.addf %6, %11 : vector<264x64xf32>
    %13 = vector.extract_strided_slice %1 {offsets = [0, 2], sizes = [264, 1], strides = [1, 1]} : vector<264x8xf32> to vector<264x1xf32>
    %c2 = arith.constant 2 : index
    %c0_5 = arith.constant 0 : index
    %14 = vector.load %arg4[%c2, %c0_5] : memref<8x64xf32, #tpu.memory_space<vmem>>, vector<1x64xf32>
    %15 = vector.broadcast %13 : vector<264x1xf32> to vector<264x64xf32>
    %16 = vector.broadcast %14 : vector<1x64xf32> to vector<264x64xf32>
    %17 = arith.mulf %15, %16 : vector<264x64xf32>
    %18 = arith.addf %12, %17 : vector<264x64xf32>
    %c0_6 = arith.constant 0 : index
    %c0_7 = arith.constant 0 : index
    %19 = vector.load %arg5[%c0_6, %c0_7] : memref<1x64xf32, #tpu.memory_space<vmem>>, vector<1x64xf32>
    %20 = vector.broadcast %19 : vector<1x64xf32> to vector<264x64xf32>
    %21 = arith.addf %18, %20 : vector<264x64xf32>
    %cst = arith.constant 0.000000e+00 : f32
    %22 = vector.broadcast %cst : f32 to vector<264x64xf32>
    %23 = arith.maximumf %21, %22 : vector<264x64xf32>
    %24 = arith.truncf %23 : vector<264x64xf32> to vector<264x64xbf16>
    %c0_8 = arith.constant 0 : index
    %c0_9 = arith.constant 0 : index
    %25 = vector.load %arg6[%c0_8, %c0_9] : memref<64x128xbf16, #tpu.memory_space<vmem>>, vector<64x128xbf16>
    %cst_10 = arith.constant dense<0.000000e+00> : vector<264x128xf32>
    %26 = tpu.matmul %24, %25, %cst_10 {dimension_numbers = #tpu.dot_dimension_numbers<[1], [0], [0], [1], [0, 0, 1, 1], [], []>} : vector<264x64xbf16>, vector<64x128xbf16>, vector<264x128xf32> -> vector<264x128xf32>
    %c0_11 = arith.constant 0 : index
    %c0_12 = arith.constant 0 : index
    %27 = vector.load %arg7[%c0_11, %c0_12] : memref<1x128xf32, #tpu.memory_space<vmem>>, vector<1x128xf32>
    %28 = vector.broadcast %27 : vector<1x128xf32> to vector<264x128xf32>
    %29 = arith.addf %26, %28 : vector<264x128xf32>
    %cst_13 = arith.constant 0.000000e+00 : f32
    %30 = vector.broadcast %cst_13 : f32 to vector<264x128xf32>
    %31 = arith.maximumf %29, %30 : vector<264x128xf32>
    %32 = arith.truncf %31 : vector<264x128xf32> to vector<264x128xbf16>
    %c0_14 = arith.constant 0 : index
    %c0_15 = arith.constant 0 : index
    %33 = vector.load %arg8[%c0_14, %c0_15] : memref<128x1024xbf16, #tpu.memory_space<vmem>>, vector<128x1024xbf16>
    %cst_16 = arith.constant dense<0.000000e+00> : vector<264x1024xf32>
    %34 = tpu.matmul %32, %33, %cst_16 {dimension_numbers = #tpu.dot_dimension_numbers<[1], [0], [0], [1], [0, 0, 1, 1], [], []>} : vector<264x128xbf16>, vector<128x1024xbf16>, vector<264x1024xf32> -> vector<264x1024xf32>
    %c1_i32 = arith.constant 1 : i32
    %35 = arith.muli %arg1, %c1_i32 : i32
    %36 = arith.addi %35, %arg2 : i32
    %c1_i32_17 = arith.constant 1 : i32
    %37 = arith.addi %36, %c1_i32_17 : i32
    %c264_i32 = arith.constant 264 : i32
    %38 = arith.muli %37, %c264_i32 : i32
    %c260_i32 = arith.constant 260 : i32
    %39 = arith.cmpi sgt, %38, %c260_i32 : i32
    %40 = arith.extui %39 : i1 to i32
    %c0_i32 = arith.constant 0 : i32
    %41 = arith.cmpi ne, %40, %c0_i32 : i32
    scf.if %41 {
      %c264_i32_19 = arith.constant 264 : i32
      %45 = arith.muli %36, %c264_i32_19 : i32
      %c260_i32_20 = arith.constant 260 : i32
      %46 = arith.subi %c260_i32_20, %45 : i32
      %47 = tpu.iota {dimensions = array<i32: 0>} : vector<264x1xi32>
      %48 = vector.broadcast %46 : i32 to vector<264x1xi32>
      %49 = arith.cmpi slt, %47, %48 : vector<264x1xi32>
      %cst_21 = arith.constant 0xFF800000 : f32
      %50 = vector.shape_cast %49 : vector<264x1xi1> to vector<264x1xi1>
      %51 = vector.broadcast %50 : vector<264x1xi1> to vector<264x1024xi1>
      %52 = vector.broadcast %cst_21 : f32 to vector<264x1024xf32>
      %53 = arith.select %51, %34, %52 : vector<264x1024xi1>, vector<264x1024xf32>
      %cst_22 = arith.constant dense<0xFF800000> : vector<1024xf32>
      %54 = vector.multi_reduction <maximumf>, %53, %cst_22 [0] : vector<264x1024xf32> to vector<1024xf32>
      %55 = vector.shape_cast %54 : vector<1024xf32> to vector<1x1024xf32>
      %c0_i32_23 = arith.constant 0 : i32
      %56 = arith.cmpi eq, %arg2, %c0_i32_23 : i32
      %57 = arith.extui %56 : i1 to i32
      %c0_i32_24 = arith.constant 0 : i32
      %58 = arith.cmpi ne, %57, %c0_i32_24 : i32
      scf.if %58 {
        %c0_27 = arith.constant 0 : index
        %c0_28 = arith.constant 0 : index
        %c0_29 = arith.constant 0 : index
        %62 = vector.load %arg9[%c0_27, %c0_28, %c0_29] : memref<1x1x1024xf32, #tpu.memory_space<vmem>>, vector<1x1x1024xf32>
        %63 = vector.shape_cast %62 : vector<1x1x1024xf32> to vector<1x1024xf32>
        %64 = vector.shape_cast %55 : vector<1x1024xf32> to vector<1x1x1024xf32>
        tpu.vector_store %arg9[%c0_27, %c0_28, %c0_29], %64 {strides = array<i32>} : memref<1x1x1024xf32, #tpu.memory_space<vmem>>, vector<1x1x1024xf32>,
      } else {
      }
      %c0_i32_25 = arith.constant 0 : i32
      %59 = arith.cmpi ne, %arg2, %c0_i32_25 : i32
      %60 = arith.extui %59 : i1 to i32
      %c0_i32_26 = arith.constant 0 : i32
      %61 = arith.cmpi ne, %60, %c0_i32_26 : i32
      scf.if %61 {
        %c0_27 = arith.constant 0 : index
        %c0_28 = arith.constant 0 : index
        %c0_29 = arith.constant 0 : index
        %62 = vector.load %arg9[%c0_27, %c0_28, %c0_29] : memref<1x1x1024xf32, #tpu.memory_space<vmem>>, vector<1x1x1024xf32>
        %63 = vector.shape_cast %62 : vector<1x1x1024xf32> to vector<1x1024xf32>
        %64 = arith.maximumf %63, %55 : vector<1x1024xf32>
        %c0_30 = arith.constant 0 : index
        %c0_31 = arith.constant 0 : index
        %c0_32 = arith.constant 0 : index
        %65 = vector.load %arg9[%c0_30, %c0_31, %c0_32] : memref<1x1x1024xf32, #tpu.memory_space<vmem>>, vector<1x1x1024xf32>
        %66 = vector.shape_cast %65 : vector<1x1x1024xf32> to vector<1x1024xf32>
        %67 = vector.shape_cast %64 : vector<1x1024xf32> to vector<1x1x1024xf32>
        tpu.vector_store %arg9[%c0_30, %c0_31, %c0_32], %67 {strides = array<i32>} : memref<1x1x1024xf32, #tpu.memory_space<vmem>>, vector<1x1x1024xf32>,
      } else {
      }
    } else {
    }
    %true = arith.constant true
    %42 = arith.xori %39, %true : i1
    %43 = arith.extui %42 : i1 to i32
    %c0_i32_18 = arith.constant 0 : i32
    %44 = arith.cmpi ne, %43, %c0_i32_18 : i32
    scf.if %44 {
      %cst_19 = arith.constant dense<0xFF800000> : vector<1024xf32>
      %45 = vector.multi_reduction <maximumf>, %34, %cst_19 [0] : vector<264x1024xf32> to vector<1024xf32>
      %46 = vector.shape_cast %45 : vector<1024xf32> to vector<1x1024xf32>
      %c0_i32_20 = arith.constant 0 : i32
      %47 = arith.cmpi eq, %arg2, %c0_i32_20 : i32
      %48 = arith.extui %47 : i1 to i32
      %c0_i32_21 = arith.constant 0 : i32
      %49 = arith.cmpi ne, %48, %c0_i32_21 : i32
      scf.if %49 {
        %c0_24 = arith.constant 0 : index
        %c0_25 = arith.constant 0 : index
        %c0_26 = arith.constant 0 : index
        %53 = vector.load %arg9[%c0_24, %c0_25, %c0_26] : memref<1x1x1024xf32, #tpu.memory_space<vmem>>, vector<1x1x1024xf32>
        %54 = vector.shape_cast %53 : vector<1x1x1024xf32> to vector<1x1024xf32>
        %55 = vector.shape_cast %46 : vector<1x1024xf32> to vector<1x1x1024xf32>
        tpu.vector_store %arg9[%c0_24, %c0_25, %c0_26], %55 {strides = array<i32>} : memref<1x1x1024xf32, #tpu.memory_space<vmem>>, vector<1x1x1024xf32>,
      } else {
      }
      %c0_i32_22 = arith.constant 0 : i32
      %50 = arith.cmpi ne, %arg2, %c0_i32_22 : i32
      %51 = arith.extui %50 : i1 to i32
      %c0_i32_23 = arith.constant 0 : i32
      %52 = arith.cmpi ne, %51, %c0_i32_23 : i32
      scf.if %52 {
        %c0_24 = arith.constant 0 : index
        %c0_25 = arith.constant 0 : index
        %c0_26 = arith.constant 0 : index
        %53 = vector.load %arg9[%c0_24, %c0_25, %c0_26] : memref<1x1x1024xf32, #tpu.memory_space<vmem>>, vector<1x1x1024xf32>
        %54 = vector.shape_cast %53 : vector<1x1x1024xf32> to vector<1x1024xf32>
        %55 = arith.maximumf %54, %46 : vector<1x1024xf32>
        %c0_27 = arith.constant 0 : index
        %c0_28 = arith.constant 0 : index
        %c0_29 = arith.constant 0 : index
        %56 = vector.load %arg9[%c0_27, %c0_28, %c0_29] : memref<1x1x1024xf32, #tpu.memory_space<vmem>>, vector<1x1x1024xf32>
        %57 = vector.shape_cast %56 : vector<1x1x1024xf32> to vector<1x1024xf32>
        %58 = vector.shape_cast %55 : vector<1x1024xf32> to vector<1x1x1024xf32>
        tpu.vector_store %arg9[%c0_27, %c0_28, %c0_29], %58 {strides = array<i32>} : memref<1x1x1024xf32, #tpu.memory_space<vmem>>, vector<1x1x1024xf32>,
      } else {
      }
    } else {
    }
    return
  }
  func.func @transform_0(%arg0: i32, %arg1: i32, %arg2: i32) -> (i32, i32, i32) {
    %c1_i32 = arith.constant 1 : i32
    %0 = arith.muli %arg1, %c1_i32 : i32
    %1 = arith.addi %0, %arg2 : i32
    %c0_i32 = arith.constant 0 : i32
    %c0_i32_0 = arith.constant 0 : i32
    return %arg0, %1, %c0_i32 : i32, i32, i32
  }
  func.func @transform_1(%arg0: i32, %arg1: i32, %arg2: i32) -> (i32, i32) {
    %c0_i32 = arith.constant 0 : i32
    %c0_i32_0 = arith.constant 0 : i32
    %c0_i32_1 = arith.constant 0 : i32
    return %c0_i32, %c0_i32_0 : i32, i32
  }
  func.func @transform_2(%arg0: i32, %arg1: i32, %arg2: i32) -> (i32, i32) {
    %c0_i32 = arith.constant 0 : i32
    %c0_i32_0 = arith.constant 0 : i32
    %c0_i32_1 = arith.constant 0 : i32
    return %c0_i32, %c0_i32_0 : i32, i32
  }
  func.func @transform_3(%arg0: i32, %arg1: i32, %arg2: i32) -> (i32, i32) {
    %c0_i32 = arith.constant 0 : i32
    %c0_i32_0 = arith.constant 0 : i32
    %c0_i32_1 = arith.constant 0 : i32
    return %c0_i32, %c0_i32_0 : i32, i32
  }
  func.func @transform_4(%arg0: i32, %arg1: i32, %arg2: i32) -> (i32, i32) {
    %c0_i32 = arith.constant 0 : i32
    %c0_i32_0 = arith.constant 0 : i32
    %c0_i32_1 = arith.constant 0 : i32
    return %c0_i32, %c0_i32_0 : i32, i32
  }
  func.func @transform_5(%arg0: i32, %arg1: i32, %arg2: i32) -> (i32, i32) {
    %c0_i32 = arith.constant 0 : i32
    %c0_i32_0 = arith.constant 0 : i32
    %c0_i32_1 = arith.constant 0 : i32
    return %c0_i32, %c0_i32_0 : i32, i32
  }
  func.func @transform_6(%arg0: i32, %arg1: i32, %arg2: i32) -> (i32, i32, i32) {
    %c1_i32 = arith.constant 1 : i32
    %0 = arith.muli %arg0, %c1_i32 : i32
    %1 = arith.addi %0, %arg1 : i32
    %c0_i32 = arith.constant 0 : i32
    %c0_i32_0 = arith.constant 0 : i32
    %c0_i32_1 = arith.constant 0 : i32
    return %1, %c0_i32, %c0_i32_0 : i32, i32, i32
  }
}

</mosaic_0001>

<bundles_post_ra>
// kernel: tpu_custom_call.1
= control target key start
LH: loop header
LB: loop body
LE: loop exit
PB: predicated region body
PF: predicated region fallthrough
CT: control target
= control target key end

     0   :  { %11 = vsyncpa [#allocation3], 0  ;;  %s5372_s0 = inlined_call_operand.vmem [shape: f32[2,264,8], index: 0, kind: input, shape index: {}]   ;;  %s5373_s1 = inlined_call_operand.vmem [shape: f32[8,64], index: 1, kind: input, shape index: {}]   ;;  %s5374_s2 = inlined_call_operand.vmem [shape: f32[1,64], index: 2, kind: input, shape index: {}]   ;;  %s5375_s3 = inlined_call_operand.vmem [shape: bf16[64,128], index: 3, kind: input, shape index: {}]   ;;  %s5376_s4 = inlined_call_operand.vmem [shape: f32[1,128], index: 4, kind: input, shape index: {}]   ;;  %s5377_s5 = inlined_call_operand.vmem [shape: bf16[128,1024], index: 5, kind: input, shape index: {}]   ;;  %s5378_s6 = inlined_call_operand.hbm [shape: f32[2,1,1024], index: 6, kind: output, shape index: {}]  }
   0x1   :  { %13 = vsyncpa [#allocation3 + $0x1], 0  ;;  %s4351_s21 = smov 0   ;;  %s4353_s22 = smov 0  }
   0x2   :  { %s4355_s23 = smov 0   ;;  %s4357_s24 = smov 0  }
   0x3   :  { %s4359_s25 = smov 0   ;;  %s4361_s26 = smov 0  }
   0x4 LB: > { %s3893_s27 = sadd.s32 4294967295, %s4307_s26   ;;  %s3894_s28 = sadd.s32 4294967294, %s4307_s26   ;;  %s4307_s26 = sphi %s4361_s26, %s19_s26   ;;  %s4303_s25 = sphi %s4359_s25, %s5385_s25   ;;  %s4299_s24 = sphi %s4357_s24, %s5384_s24   ;;  %s4295_s23 = sphi %s4355_s23, %s5383_s23   ;;  %s4291_s22 = sphi %s4353_s22, %s5382_s22   ;;  %s4287_s21 = sphi %s4351_s21, %s5381_s21  }
   0x5   : > { %s38_s29 = sadd.s32 1, %s4303_s25  ;;  %s182_s30 = sadd.s32 1, %s4295_s23 }
   0x6   : > { %p40_p0 = scmp.ge.s32.totalorder %s38_s29, 2  ;;  %p192_p1 = scmp.ne.s32.totalorder %s4295_s23, %s4291_s22 }
   0x7   : > { %p193_p2 = scmp.eq.s32.totalorder %s3893_s27, 1  ;;  %p198_p3 = scmp.ne.s32.totalorder %s4291_s22, %s4287_s21 }
   0x8   : > { %s5387_s29 = smov (%p40_p0, %s38_s29), 0  ;;  %p199_p5 = scmp.eq.s32.totalorder %s3894_s28, 1 }
   0x9   : > { %p4391_p4 = por %p193_p2, %p192_p1  ;;  %s179_s8 = ssub.s32 %s4303_s25, %s5387_s29 }
   0xa   : > { %p3897_p6 = scmp.ge.s32.totalorder %s4307_s26, 1  ;;  %p180_p7 = scmp.eq.s32.totalorder %s179_s8, 0 }
   0xb   : > { %p4398_p8 = por %p199_p5, %p198_p3  ;;  %p247_p9 = scmp.lt.s32.totalorder %s4307_s26, 3 }
   0xc   : > { %s4404_s10 = scalar_select %p180_p7, %s4295_s23, %s182_s30  }
   0xd   : > { %p248_p10 = pnand %p3897_p6, %p247_p9 }
   0xe   : > { %p284_p11 = scmp.lt.s32.totalorder (!%p248_p10), %s4299_s24, 1  ;;  %v4309_v0 = vmov (!%p248_p10), 2   ;;  %v4310_v1 = vmov (!%p248_p10), 1   ;;  %v4311_v6 = vmov (!%p248_p10), 0   ;;  %v4221_v7 = vld [vmem:[%s5375_s3] sm:$0xff] (!%p248_p10)   ;;  %v4312_v8 = vmov (!%p248_p10), 0.0  }
   0xf   : > { %251 = sbr.rel (%p248_p10) target bundleno = 1076 (0x434), region = 44  ;;  %4164 = vset.pattern.permute.xlu0 (!%p248_p10), %v4309_v0  ;;  %4163 = vset.pattern.permute.xlu1 (!%p248_p10), %v4310_v1  ;;  %v4222_v9 = vld [vmem:[%s5375_s3 + $0x8] sm:$0xff] (!%p248_p10)   ;;  %v4223_v11 = vld [vmem:[%s5375_s3 + $0x10] sm:$0xff] (!%p248_p10)   ;;  %v4224_v13 = vld [vmem:[%s5375_s3 + $0x18] sm:$0xff] (!%p248_p10)   ;;  %vm4313_vm0 = vmmov (!%p248_p10), 0   ;;  %vm1067_vm1 = vcmask (!%p248_p10), 523264  }
  0x10   : > { %4017 = vmatprep.subr.bf16.mxu0 (!%p248_p10), %v4312_v8  ;;  %4093 = vmatprep.subr.bf16.mxu1 (!%p248_p10), %v4312_v8  ;;  %v4547_v43 = vld [vmem:[%s5373_s1 + $0x1] ss:$0 sm:$0xff] (!%p248_p10)  ;;  %v4552_v44 = vld [vmem:[%s5373_s1] ss:$0 sm:$0xff] (!%p248_p10)  ;;  %v4557_v45 = vld [vmem:[%s5373_s1 + $0x2] ss:$0 sm:$0xff] (!%p248_p10) }
  0x11   : > { %4018 = vmatpush3.bf16.msra.mxu0 (!%p248_p10), %v4221_v7  ;;  %4097 = vmatpush3.bf16.msra.mxu1 (!%p248_p10), %v4221_v7  ;;  %v4573_v57 = vld [vmem:[%s5374_s2] ss:$0 sm:$0xff] (!%p248_p10)  ;;  %s279_s17 = sand.u32 (!%p248_p10), 1, %s4291_s22  }
  0x12   : > { %4019 = vmatprep.subr.bf16.mxu0 (!%p248_p10), %v4312_v8  ;;  %4094 = vmatprep.subr.bf16.mxu1 (!%p248_p10), %v4312_v8  ;;  %s3898_s18 = sshll.u32 (!%p248_p10), %s279_s17, 3 }
  0x13   : > { %4025 = vmatprep.mubr.msk.bf16.mxu0 (!%p248_p10), %vm4313_vm0, %v4312_v8  ;;  %4061 = vmatprep.mubr.msk.bf16.mxu1 (!%p248_p10), %vm4313_vm0, %v4312_v8  ;;  %s281_s19 = scalar_lea.vmem (!%p248_p10), [#allocation2], %s3898_s18 }
  0x14   : > { %s3816_s20 = sshll.u32 (!%p248_p10), %s281_s19, 4  ;;  %s5327_s20 = int_to_ptr.vmem [resolvable:$true] %s3816_s20 }
  0x15   : > { %4020 = vmatpush3.bf16.msra.mxu0 (!%p248_p10), %v4222_v9  ;;  %4098 = vmatpush3.bf16.msra.mxu1 (!%p248_p10), %v4222_v9  ;;  %s4229_s8 = scalar_lea.vmem (!%p248_p10), %s5327_s20, 128 }
  0x16   : > { %s285_s11 = scalar_select %p284_p11, %s4299_s24, 1  ;;  %4021 = vmatprep.subr.bf16.mxu0 %v4312_v8  ;;  %4095 = vmatprep.subr.bf16.mxu1 %v4312_v8 }
  0x17   : > { %p4230_p12 = scmp.ne.s32.totalorder %s5327_s20, %s4229_s8 }
  0x18   : > { %s4101_s12 = smul.u32 264, %s285_s11  ;;  %s4315_s11 = smov [#allocation2]  }
  0x19   : > { %4022 = vmatpush3.bf16.msra.mxu0 %v4223_v11  ;;  %4099 = vmatpush3.bf16.msra.mxu1 %v4223_v11  ;;  %p4231_p13 = pnand %p4230_p12, %p4391_p4 }
  0x1a   : > { %s4413_s15 = scalar_lea.vmem %s5372_s0, %s4101_s12  ;;  %4023 = vmatprep.subr.bf16.mxu0 %v4312_v8  ;;  %4096 = vmatprep.subr.bf16.mxu1 %v4312_v8  ;;  %s4233_s12 = sshll.u32 %s4315_s11, 4  ;;  %s4234_s12 = int_to_ptr.vmem [resolvable:$false] %s4233_s12 }
  0x1b   : > { %v296_v2 = vld [vmem:[%s4413_s15] sm:$0xff]  ;;  %v298_v3 = vld [vmem:[%s4413_s15 + $0x10] sm:$0xff]  ;;  %v297_v4 = vld [vmem:[%s4413_s15 + $0x8] sm:$0xff]  ;;  %p4232_p0 = pneg %p4231_p13  ;;  %s4235_s13 = scalar_lea.vmem %s4234_s12, 256 }
  0x1c   : > { %737 = vperm.xlu0 %4164, %v296_v2   ;;  %534 = vperm.xlu1 %4163, %v296_v2   ;;  %v300_v5 = vld [vmem:[%s4413_s15 + $0x20] sm:$0xff]  ;;  %v299_v10 = vld [vmem:[%s4413_s15 + $0x18] sm:$0xff]  ;;  %v301_v12 = vld [vmem:[%s4413_s15 + $0x28] sm:$0xff]  ;;  %p4236_p1 = scmp.lt.s32.totalorder %s5327_s20, %s4234_s12  ;;  %p4237_p2 = scmp.lt.s32.totalorder %s4235_s13, %s4229_s8 }
  0x1d   : > { %v303_v14 = vld [vmem:[%s4413_s15 + $0x38] sm:$0xff]  ;;  %4024 = vmatpush3.bf16.msra.mxu0 %v4224_v13  ;;  %4100 = vmatpush3.bf16.msra.mxu1 %v4224_v13  ;;  %v305_v15 = vld [vmem:[%s4413_s15 + $0x48] sm:$0xff]  ;;  %v302_v19 = vld [vmem:[%s4413_s15 + $0x30] sm:$0xff] }
  0x1e   : > { %v307_v16 = vld [vmem:[%s4413_s15 + $0x58] sm:$0xff]  ;;  %v4456_v17 = vld [vmem:[%s4413_s15 + $0x68] sm:$0xff]  ;;  %v304_v20 = vld [vmem:[%s4413_s15 + $0x40] sm:$0xff]  ;;  %p4238_p3 = por %p4237_p2, %p4236_p1 }
  0x1f   : > { %v4460_v18 = vld [vmem:[%s4413_s15 + $0x78] sm:$0xff]  ;;  %v306_v21 = vld [vmem:[%s4413_s15 + $0x50] sm:$0xff]  ;;  %v308_v22 = vld [vmem:[%s4413_s15 + $0x60] sm:$0xff] }
  0x20   : > { %745 = vperm.xlu0 %4164, %v298_v3   ;;  %538 = vperm.xlu1 %4163, %v297_v4   ;;  %v310_v23 = vld [vmem:[%s4413_s15 + $0x70] sm:$0xff]  ;;  %v4474_v24 = vld [vmem:[%s4413_s15 + $0x80] sm:$0xff]  ;;  %v4488_v27 = vld [vmem:[%s4413_s15 + $0x88] sm:$0xff]  ;;  %p4239_p5 = pnand %p4238_p3, %p4232_p0 }
  0x21   : > { %v4479_v25 = vld [vmem:[%s4413_s15 + $0x90] sm:$0xff]  ;;  %v4484_v26 = vld [vmem:[%s4413_s15 + $0xa0] sm:$0xff]  ;;  %v4494_v28 = vld [vmem:[%s4413_s15 + $0x98] sm:$0xff] }
  0x22   : > { %v4498_v29 = vld [vmem:[%s4413_s15 + $0xa8] sm:$0xff]  ;;  %v4503_v30 = vld [vmem:[%s4413_s15 + $0xb8] sm:$0xff]  ;;  %v4517_v33 = vld [vmem:[%s4413_s15 + $0xb0] sm:$0xff] }
  0x23   : > { %v4508_v31 = vld [vmem:[%s4413_s15 + $0xc8] sm:$0xff]  ;;  %v4512_v32 = vld [vmem:[%s4413_s15 + $0xd8] sm:$0xff]  ;;  %v4523_v34 = vld [vmem:[%s4413_s15 + $0xc0] sm:$0xff] }
  0x24   : > { %753 = vperm.xlu0 %4164, %v300_v5   ;;  %4165 = vset.pattern.permute.xlu1 %v4309_v0  ;;  %v4528_v35 = vld [vmem:[%s4413_s15 + $0xd0] sm:$0xff]  ;;  %v4537_v40 = vld [vmem:[%s4413_s15 + $0xe0] sm:$0xff]  ;;  %v4564_v51 = vld [vmem:[%s4413_s15 + $0xe8] sm:$0xff] }
  0x25   : > { %741 = vperm.xlu1 %4165, %v297_v4  }
  0x28   : > { %4171 = vset.pattern.permute.xlu0 %v4311_v6 }
  0x29   : > { %332 = vperm.xlu0 %4171, %v296_v2   ;;  %4166 = vset.pattern.permute.xlu1 %v4311_v6 }
  0x2a   : > { %342 = vperm.xlu1 %4166, %v298_v3  }
  0x2d   : > { %337 = vperm.xlu0 %4171, %v297_v4  }
  0x2e   : > { %4167 = vset.pattern.permute.xlu1 %v4310_v1 }
  0x2f   : > { %542 = vperm.xlu1 %4167, %v298_v3  }
  0x31   : > { %347 = vperm.xlu0 %4171, %v299_v10  }
  0x33   : > { %546 = vperm.xlu1 %4167, %v299_v10  }
  0x35   : > { %357 = vperm.xlu0 %4171, %v301_v12  }
  0x37   : > { %4168 = vset.pattern.permute.xlu1 %v4309_v0 }
  0x38   : > { %749 = vperm.xlu1 %4168, %v299_v10  }
  0x39   : > { %367 = vperm.xlu0 %4171, %v303_v14  }
  0x3c   : > { %4169 = vset.pattern.permute.xlu1 %v4311_v6 }
  0x3d   : > { %352 = vperm.xlu1 %4169, %v300_v5   ;;  %377 = vperm.xlu0 %4171, %v305_v15  }
  0x41   : > { %4170 = vset.pattern.permute.xlu1 %v4310_v1  ;;  %387 = vperm.xlu0 %4171, %v307_v16  }
  0x42   : > { %550 = vperm.xlu1 %4170, %v300_v5  }
  0x45   : > { %397 = vperm.xlu0 %4171, %v4456_v17  }
  0x46   : > { %554 = vperm.xlu1 %4170, %v301_v12  }
  0x49   : > { %407 = vperm.xlu0 %4171, %v4460_v18  }
  0x4a   : > { %4172 = vset.pattern.permute.xlu1 %v4309_v0 }
  0x4b   : > { %757 = vperm.xlu1 %4172, %v301_v12  }
  0x4d   : > { %4186 = vset.pattern.permute.xlu0 %v4309_v0 }
  0x4e   : > { %761 = vperm.xlu0 %4186, %v302_v19  }
  0x4f   : > { %4173 = vset.pattern.permute.xlu1 %v4311_v6 }
  0x50   : > { %362 = vperm.xlu1 %4173, %v302_v19  }
  0x52   : > { %769 = vperm.xlu0 %4186, %v304_v20  }
  0x54   : > { %4174 = vset.pattern.permute.xlu1 %v4310_v1 }
  0x55   : > { %558 = vperm.xlu1 %4174, %v302_v19  }
  0x56   : > { %777 = vperm.xlu0 %4186, %v306_v21  }
  0x59   : > { %562 = vperm.xlu1 %4174, %v303_v14  }
  0x5a   : > { %785 = vperm.xlu0 %4186, %v308_v22  }
  0x5d   : > { %4175 = vset.pattern.permute.xlu1 %v4309_v0 }
  0x5e   : > { %765 = vperm.xlu1 %4175, %v303_v14   ;;  %793 = vperm.xlu0 %4186, %v310_v23  }
  0x62   : > { %4176 = vset.pattern.permute.xlu1 %v4311_v6  ;;  %801 = vperm.xlu0 %4186, %v4474_v24  }
  0x63   : > { %372 = vperm.xlu1 %4176, %v304_v20  }
  0x66   : > { %809 = vperm.xlu0 %4186, %v4479_v25  }
  0x67   : > { %4177 = vset.pattern.permute.xlu1 %v4310_v1 }
  0x68   : > { %566 = vperm.xlu1 %4177, %v304_v20  }
  0x6a   : > { %817 = vperm.xlu0 %4186, %v4484_v26  }
  0x6c   : > { %570 = vperm.xlu1 %4177, %v305_v15  }
  0x6e   : > { %4197 = vset.pattern.permute.xlu0 %v4311_v6 }
  0x6f   : > { %417 = vperm.xlu0 %4197, %v4488_v27  }
  0x70   : > { %4178 = vset.pattern.permute.xlu1 %v4309_v0 }
  0x71   : > { %773 = vperm.xlu1 %4178, %v305_v15   ;;  %v4588_v15 = vld [vmem:[%s4413_s15 + $0xf8] sm:$0xff] }
  0x73   : > { %427 = vperm.xlu0 %4197, %v4494_v28  }
  0x75   : > { %4179 = vset.pattern.permute.xlu1 %v4311_v6 }
  0x76   : > { %382 = vperm.xlu1 %4179, %v306_v21  }
  0x77   : > { %437 = vperm.xlu0 %4197, %v4498_v29  }
  0x7a   : > { %4180 = vset.pattern.permute.xlu1 %v4310_v1 }
  0x7b   : > { %574 = vperm.xlu1 %4180, %v306_v21   ;;  %447 = vperm.xlu0 %4197, %v4503_v30  }
  0x7f   : > { %578 = vperm.xlu1 %4180, %v307_v16   ;;  %457 = vperm.xlu0 %4197, %v4508_v31  }
  0x83   : > { %4181 = vset.pattern.permute.xlu1 %v4309_v0  ;;  %467 = vperm.xlu0 %4197, %v4512_v32  }
  0x84   : > { %781 = vperm.xlu1 %4181, %v307_v16  }
  0x87   : > { %4206 = vset.pattern.permute.xlu0 %v4309_v0 }
  0x88   : > { %4182 = vset.pattern.permute.xlu1 %v4311_v6  ;;  %825 = vperm.xlu0 %4206, %v4517_v33  }
  0x89   : > { %392 = vperm.xlu1 %4182, %v308_v22  }
  0x8c   : > { %833 = vperm.xlu0 %4206, %v4523_v34  }
  0x8d   : > { %4183 = vset.pattern.permute.xlu1 %v4310_v1 }
  0x8e   : > { %582 = vperm.xlu1 %4183, %v308_v22  }
  0x90   : > { %841 = vperm.xlu0 %4206, %v4528_v35  }
  0x92   : > { %586 = vperm.xlu1 %4183, %v4456_v17  }
  0x94   : > { %849 = vperm.xlu0 %4206, %v4537_v40  }
  0x96   : > { %4184 = vset.pattern.permute.xlu1 %v4309_v0 }
  0x97   : > { %789 = vperm.xlu1 %4184, %v4456_v17  }
  0x98   : > { %4211 = vset.pattern.permute.xlu0 %v4311_v6 }
  0x99   : > { %477 = vperm.xlu0 %4211, %v4564_v51  }
  0x9b   : > { %4185 = vset.pattern.permute.xlu1 %v4311_v6  ;;  %v535_v36 = vpop.permute.xlu1 %534  ;;  %v738_v37 = vpop.permute.xlu0 %737 }
  0x9c   : > { %402 = vperm.xlu1 %4185, %v310_v23   ;;  %v669_v47 = vmul.f32 %v4547_v43, %v535_v36  ;;  %v872_v48 = vmul.f32 %v4557_v45, %v738_v37 }
  0x9d   : > { %487 = vperm.xlu0 %4211, %v4588_v15  }
  0x9f   : > { %v539_v38 = vpop.permute.xlu1 %538  ;;  %v746_v39 = vpop.permute.xlu0 %745 }
  0xa0   : > { %4187 = vset.pattern.permute.xlu1 %v4310_v1  ;;  %v670_v54 = vmul.f32 %v4547_v43, %v539_v38  ;;  %v874_v4 = vmul.f32 %v4557_v45, %v746_v39 }
  0xa1   : > { %590 = vperm.xlu1 %4187, %v310_v23   ;;  %4215 = vset.pattern.permute.xlu0 %v4309_v0 }
  0xa3   : > { %v4540_v41 = vpop.permute.xlu0 %753 }
  0xa4   : > { %v742_v42 = vpop.permute.xlu1 %741 }
  0xa5   : > { %594 = vperm.xlu1 %4187, %v4460_v18   ;;  %v873_v59 = vmul.f32 %v4557_v45, %v742_v42 }
  0xa8   : > { %v333_v46 = vpop.permute.xlu0 %332 }
  0xa9   : > { %v499_v49 = vmul.f32 %v4552_v44, %v333_v46  ;;  %4188 = vset.pattern.permute.xlu1 %v4309_v0  ;;  %v343_v50 = vpop.permute.xlu1 %342 }
  0xaa   : > { %797 = vperm.xlu1 %4188, %v4460_v18   ;;  %v501_v62 = vmul.f32 %v4552_v44, %v343_v50  ;;  %v876_v50 = vmul.f32 %v4557_v45, %v4540_v41 }
  0xab   : > { %v702_v52 = vadd.f32 %v669_v47, %v499_v49 }
  0xac   : > { %v338_v53 = vpop.permute.xlu0 %337 }
  0xad   : > { %v905_v55 = vadd.f32 %v872_v48, %v702_v52  ;;  %v500_v56 = vmul.f32 %v4552_v44, %v338_v53 }
  0xae   : > { %4189 = vset.pattern.permute.xlu1 %v4311_v6  ;;  %v543_v58 = vpop.permute.xlu1 %542 }
  0xaf   : > { %v703_v60 = vadd.f32 %v670_v54, %v500_v56  ;;  %v671_v61 = vmul.f32 %v4547_v43, %v543_v58  ;;  %412 = vperm.xlu1 %4189, %v4474_v24   ;;  %v945_v2 = vadd.f32 %v4573_v57, %v905_v55  ;;  %v4623_v54 = vld [vmem:[%s4413_s15 + $0x100] sm:$0xff] }
  0xb0   : > { %v348_v63 = vpop.permute.xlu0 %347 }
  0xb1   : > { %v906_v3 = vadd.f32 %v873_v59, %v703_v60  ;;  %v704_v5 = vadd.f32 %v671_v61, %v501_v62  ;;  %v502_v10 = vmul.f32 %v4552_v44, %v348_v63  ;;  %v978_v13 = vmax.f32 %v945_v2, 0.0 }
  0xb2   : > { %v547_v7 = vpop.permute.xlu1 %546 }
  0xb3   : > { %v946_v9 = vadd.f32 %v4573_v57, %v906_v3  ;;  %4190 = vset.pattern.permute.xlu1 %v4310_v1  ;;  %v672_v11 = vmul.f32 %v4547_v43, %v547_v7  ;;  %v907_v16 = vadd.f32 %v874_v4, %v704_v5 }
  0xb4   : > { %598 = vperm.xlu1 %4190, %v4474_v24   ;;  %v358_v12 = vpop.permute.xlu0 %357  ;;  %v4600_v24 = vld [vmem:[%s4413_s15 + $0xf0] sm:$0xff]  ;;  %s3995_s15 = sshll.u32 %s4299_s24, 7  ;;  %s3801_s24 = scalar_lea.sflag [#allocation3], %s279_s17 }
  0xb5   : > { %v979_v14 = vmax.f32 %v946_v9, 0.0  ;;  %v705_v19 = vadd.f32 %v672_v11, %v502_v10  ;;  %v947_v22 = vadd.f32 %v4573_v57, %v907_v16  ;;  %857 = vperm.xlu0 %4215, %v4600_v24   ;;  %v504_v55 = vmul.f32 %v4552_v44, %v358_v12  ;;  %s5325_s30 = scalar_lea.hbm %s5378_s6, %s3995_s15 }
  0xb7   : > { %v750_v17 = vpop.permute.xlu1 %749  ;;  %v1011_v18 = vpack.c.bf16 %v979_v14, %v978_v13  ;;  %v980_v39 = vmax.f32 %v947_v22, 0.0 }
  0xb8   : > { %v875_v20 = vmul.f32 %v4557_v45, %v750_v17  ;;  %602 = vperm.xlu1 %4190, %v4488_v27   ;;  %v4593_v21 = vpop.permute.xlu0 %367 }
  0xb9   : > { %4026 = vmatmul.mubr.msk.bf16.vlgmr.msra.gmra.mrb[0].mxu0 %vm1067_vm1, %v1011_v18  ;;  %4218 = vset.pattern.permute.xlu0 %v4310_v1  ;;  %v506_v16 = vmul.f32 %v4552_v44, %v4593_v21 }
  0xba   : > { %v908_v23 = vadd.f32 %v875_v20, %v705_v19  ;;  %4029 = vmatprep.mubr.msk.bf16.mxu0 %vm4313_vm0, %v4312_v8  ;;  %662 = vperm.xlu0 %4218, %v4623_v54  }
  0xbc   : > { %v948_v36 = vadd.f32 %v4573_v57, %v908_v23  ;;  %4191 = vset.pattern.permute.xlu1 %v4309_v0  ;;  %v353_v37 = vpop.permute.xlu1 %352  ;;  %v4607_v38 = vpop.permute.xlu0 %377 }
  0xbd   : > { %805 = vperm.xlu1 %4191, %v4488_v27   ;;  %v503_v49 = vmul.f32 %v4552_v44, %v353_v37 }
  0xbe   : > { %v981_v42 = vmax.f32 %v948_v36, 0.0  ;;  %4220 = vset.pattern.permute.xlu0 %v4309_v0 }
  0xc0   : > { %v1012_v46 = vpack.c.bf16 %v981_v42, %v980_v39  ;;  %v4615_v27 = vpop.permute.xlu0 %387 }
  0xc1   : > { %4192 = vset.pattern.permute.xlu1 %v4311_v6  ;;  %v551_v47 = vpop.permute.xlu1 %550 }
  0xc2   : > { %v673_v48 = vmul.f32 %v4547_v43, %v551_v47  ;;  %422 = vperm.xlu1 %4192, %v4479_v25   ;;  %4030 = vmatmul.mubr.msk.bf16.gmra.mrb[4].mxu0 %vm1067_vm1, %v1012_v46 }
  0xc3   : > { %4033 = vmatprep.mubr.msk.bf16.mxu0 %vm4313_vm0, %v4312_v8 }
  0xc4   : > { %v706_v52 = vadd.f32 %v673_v48, %v503_v49  ;;  %v4629_v59 = vpop.permute.xlu0 %397 }
  0xc5   : > { %v555_v53 = vpop.permute.xlu1 %554 }
  0xc6   : > { %4193 = vset.pattern.permute.xlu1 %v4310_v1  ;;  %v674_v56 = vmul.f32 %v4547_v43, %v555_v53  ;;  %v909_v58 = vadd.f32 %v876_v50, %v706_v52  ;;  %v508_v53 = vmul.f32 %v4552_v44, %v4607_v38 }
  0xc7   : > { %606 = vperm.xlu1 %4193, %v4479_v25  }
  0xc8   : > { %v707_v61 = vadd.f32 %v674_v56, %v504_v55  ;;  %v949_v62 = vadd.f32 %v4573_v57, %v909_v58  ;;  %v4637_v3 = vpop.permute.xlu0 %407 }
  0xca   : > { %v758_v60 = vpop.permute.xlu1 %757  ;;  %v982_v4 = vmax.f32 %v949_v62, 0.0  ;;  %v1342_v62 = vld [vmem:[%s5377_s5 + $0x28] sm:$0xff] }
  0xcb   : > { %v877_v41 = vmul.f32 %v4557_v45, %v758_v60  ;;  %610 = vperm.xlu1 %4193, %v4494_v28  }
  0xcd   : > { %v910_v63 = vadd.f32 %v877_v41, %v707_v61  ;;  %v762_v11 = vpop.permute.xlu0 %761  ;;  %v1338_v41 = vld [vmem:[%s5377_s5 + $0x8] sm:$0xff] }
  0xcf   : > { %v950_v2 = vadd.f32 %v4573_v57, %v910_v63  ;;  %4194 = vset.pattern.permute.xlu1 %v4309_v0  ;;  %v363_v25 = vpop.permute.xlu1 %362 }
  0xd0   : > { %813 = vperm.xlu1 %4194, %v4494_v28   ;;  %v505_v12 = vmul.f32 %v4552_v44, %v363_v25  ;;  %v878_v28 = vmul.f32 %v4557_v45, %v762_v11 }
  0xd1   : > { %v983_v5 = vmax.f32 %v950_v2, 0.0  ;;  %v770_v48 = vpop.permute.xlu0 %769  ;;  %v3929_v2 = vcombine.high %v1338_v41, %v1342_v62 }
  0xd3   : > { %v1013_v7 = vpack.c.bf16 %v983_v5, %v982_v4  ;;  %1922 = vmatprep.subr.bf16.mxu0 %v3929_v2  ;;  %v1346_v5 = vld [vmem:[%s5377_s5 + $0x48] sm:$0xff] }
  0xd4   : > { %4195 = vset.pattern.permute.xlu1 %v4311_v6  ;;  %v559_v9 = vpop.permute.xlu1 %558  ;;  %v1386_v2 = vld [vmem:[%s5377_s5 + $0x188] sm:$0xff] }
  0xd5   : > { %v675_v10 = vmul.f32 %v4547_v43, %v559_v9  ;;  %432 = vperm.xlu1 %4195, %v4484_v26   ;;  %4034 = vmatmul.mubr.msk.bf16.gmra.mrb[8].mxu0 %vm1067_vm1, %v1013_v7  ;;  %v1350_v7 = vld [vmem:[%s5377_s5 + $0x68] sm:$0xff] }
  0xd6   : > { %4037 = vmatprep.mubr.msk.bf16.mxu0 %vm4313_vm0, %v4312_v8  ;;  %v3937_v11 = vcombine.high %v1346_v5, %v1350_v7 }
  0xd7   : > { %v708_v13 = vadd.f32 %v675_v10, %v505_v12  ;;  %v3936_v12 = vcombine.low %v1346_v5, %v1350_v7 }
  0xd8   : > { %v563_v14 = vpop.permute.xlu1 %562 }
  0xd9   : > { %4196 = vset.pattern.permute.xlu1 %v4310_v1  ;;  %v676_v17 = vmul.f32 %v4547_v43, %v563_v14  ;;  %v911_v18 = vadd.f32 %v878_v28, %v708_v13  ;;  %v1358_v14 = vld [vmem:[%s5377_s5 + $0xa8] sm:$0xff] }
  0xda   : > { %614 = vperm.xlu1 %4196, %v4484_v26  }
  0xdb   : > { %v709_v20 = vadd.f32 %v676_v17, %v506_v16  ;;  %v951_v23 = vadd.f32 %v4573_v57, %v911_v18  ;;  %v778_v17 = vpop.permute.xlu0 %777 }
  0xdd   : > { %v766_v19 = vpop.permute.xlu1 %765  ;;  %v984_v21 = vmax.f32 %v951_v23, 0.0  ;;  %v882_v23 = vmul.f32 %v4557_v45, %v778_v17  ;;  %v512_v17 = vmul.f32 %v4552_v44, %v4629_v59 }
  0xde   : > { %v879_v22 = vmul.f32 %v4557_v45, %v766_v19  ;;  %618 = vperm.xlu1 %4196, %v4498_v29  }
  0xe0   : > { %v912_v36 = vadd.f32 %v879_v22, %v709_v20 }
  0xe2   : > { %v952_v37 = vadd.f32 %v4573_v57, %v912_v36  ;;  %4198 = vset.pattern.permute.xlu1 %v4309_v0  ;;  %v373_v39 = vpop.permute.xlu1 %372 }
  0xe3   : > { %821 = vperm.xlu1 %4198, %v4498_v29   ;;  %v507_v49 = vmul.f32 %v4552_v44, %v373_v39  ;;  %v880_v29 = vmul.f32 %v4557_v45, %v770_v48  ;;  %v1366_v39 = vld [vmem:[%s5377_s5 + $0xe8] sm:$0xff] }
  0xe4   : > { %v985_v42 = vmax.f32 %v952_v37, 0.0  ;;  %v1362_v37 = vld [vmem:[%s5377_s5 + $0xc8] sm:$0xff] }
  0xe5   : > { %v1370_v48 = vld [vmem:[%s5377_s5 + $0x108] sm:$0xff] }
  0xe6   : > { %v1014_v26 = vpack.c.bf16 %v985_v42, %v984_v21  ;;  %v3953_v21 = vcombine.high %v1362_v37, %v1366_v39  ;;  %v510_v42 = vmul.f32 %v4552_v44, %v4615_v27 }
  0xe7   : > { %4199 = vset.pattern.permute.xlu1 %v4311_v6  ;;  %v567_v46 = vpop.permute.xlu1 %566 }
  0xe8   : > { %v677_v47 = vmul.f32 %v4547_v43, %v567_v46  ;;  %442 = vperm.xlu1 %4199, %v4517_v33   ;;  %4038 = vmatmul.mubr.msk.bf16.gmra.mrb[12].mxu0 %vm1067_vm1, %v1014_v26  ;;  %v3952_v46 = vcombine.low %v1362_v37, %v1366_v39 }
  0xe9   : > { %4041 = vmatprep.mubr.msk.bf16.mxu0 %vm4313_vm0, %v4312_v8 }
  0xea   : > { %v710_v50 = vadd.f32 %v677_v47, %v507_v49  ;;  %v1374_v49 = vld [vmem:[%s5377_s5 + $0x128] sm:$0xff] }
  0xeb   : > { %v571_v52 = vpop.permute.xlu1 %570 }
  0xec   : > { %4200 = vset.pattern.permute.xlu1 %v4310_v1  ;;  %v678_v55 = vmul.f32 %v4547_v43, %v571_v52  ;;  %v913_v56 = vadd.f32 %v880_v29, %v710_v50  ;;  %v3961_v29 = vcombine.high %v1370_v48, %v1374_v49 }
  0xed   : > { %622 = vperm.xlu1 %4200, %v4517_v33   ;;  %v3928_v33 = vcombine.low %v1338_v41, %v1342_v62 }
  0xee   : > { %v711_v60 = vadd.f32 %v678_v55, %v508_v53  ;;  %v953_v38 = vadd.f32 %v4573_v57, %v913_v56  ;;  %v1378_v56 = vld [vmem:[%s5377_s5 + $0x148] sm:$0xff] }
  0xef   : > { %1923 = vmatpush1.bf16.msra.mxu0 %v3928_v33  ;;  %v1390_v33 = vld [vmem:[%s5377_s5 + $0x1a8] sm:$0xff] }
  0xf0   : > { %v774_v58 = vpop.permute.xlu1 %773  ;;  %v986_v9 = vmax.f32 %v953_v38, 0.0  ;;  %1924 = vmatprep.subr.bf16.mxu0 %v3937_v11  ;;  %v3976_v5 = vcombine.low %v1386_v2, %v1390_v33  ;;  %v1398_v11 = vld [vmem:[%s5377_s5 + $0x1e8] sm:$0xff] }
  0xf1   : > { %v881_v61 = vmul.f32 %v4557_v45, %v774_v58  ;;  %626 = vperm.xlu1 %4200, %v4503_v30   ;;  %v1382_v58 = vld [vmem:[%s5377_s5 + $0x168] sm:$0xff] }
  0xf2   : > { %v3968_v62 = vcombine.low %v1378_v56, %v1382_v58 }
  0xf3   : > { %v914_v63 = vadd.f32 %v881_v61, %v711_v60  ;;  %1925 = vmatpush1.bf16.msra.mxu0 %v3936_v12  ;;  %v3969_v60 = vcombine.high %v1378_v56, %v1382_v58 }
  0xf5   : > { %v954_v25 = vadd.f32 %v4573_v57, %v914_v63  ;;  %4201 = vset.pattern.permute.xlu1 %v4309_v0  ;;  %v383_v4 = vpop.permute.xlu1 %382 }
  0xf6   : > { %829 = vperm.xlu1 %4201, %v4503_v30   ;;  %v1354_v30 = vld [vmem:[%s5377_s5 + $0x88] sm:$0xff]  ;;  %v509_v19 = vmul.f32 %v4552_v44, %v383_v4 }
  0xf7   : > { %v987_v10 = vmax.f32 %v954_v25, 0.0  ;;  %v3945_v18 = vcombine.high %v1354_v30, %v1358_v14  ;;  %v3944_v20 = vcombine.low %v1354_v30, %v1358_v14  ;;  %v3977_v25 = vcombine.high %v1386_v2, %v1390_v33 }
  0xf9   : > { %v1015_v13 = vpack.c.bf16 %v987_v10, %v986_v9  ;;  %1926 = vmatprep.subr.bf16.mxu0 %v3945_v18  ;;  %v786_v9 = vpop.permute.xlu0 %785  ;;  %v1394_v10 = vld [vmem:[%s5377_s5 + $0x1c8] sm:$0xff] }
  0xfa   : > { %4202 = vset.pattern.permute.xlu1 %v4311_v6  ;;  %v575_v28 = vpop.permute.xlu1 %574  ;;  %1927 = vmatpush1.bf16.msra.mxu0 %v3944_v20  ;;  %v884_v14 = vmul.f32 %v4557_v45, %v786_v9 }
  0xfb   : > { %v679_v16 = vmul.f32 %v4547_v43, %v575_v28  ;;  %452 = vperm.xlu1 %4202, %v4523_v34   ;;  %4042 = vmatmul.mubr.msk.bf16.gmra.mrb[16].mxu0 %vm1067_vm1, %v1015_v13  ;;  %v3985_v13 = vcombine.high %v1394_v10, %v1398_v11  ;;  %v3984_v28 = vcombine.low %v1394_v10, %v1398_v11  ;;  %v1337_v11 = vld [vmem:[%s5377_s5] sm:$0xff] }
  0xfc   : > { %4045 = vmatprep.mubr.msk.bf16.mxu0 %vm4313_vm0, %v4312_v8  ;;  %1928 = vmatprep.subr.bf16.mxu0 %v3953_v21 }
  0xfd   : > { %v712_v22 = vadd.f32 %v679_v16, %v509_v19 }
  0xfe   : > { %v579_v36 = vpop.permute.xlu1 %578  ;;  %1929 = vmatpush1.bf16.msra.mxu0 %v3952_v46  ;;  %v794_v46 = vpop.permute.xlu0 %793 }
  0xff   : > { %4203 = vset.pattern.permute.xlu1 %v4310_v1  ;;  %v680_v26 = vmul.f32 %v4547_v43, %v579_v36  ;;  %v915_v47 = vadd.f32 %v882_v23, %v712_v22  ;;  %1930 = vmatprep.subr.bf16.mxu0 %v3961_v29 }
 0x100   : > { %630 = vperm.xlu1 %4203, %v4523_v34   ;;  %v3960_v34 = vcombine.low %v1370_v48, %v1374_v49 }
 0x101   : > { %v713_v52 = vadd.f32 %v680_v26, %v510_v42  ;;  %v955_v53 = vadd.f32 %v4573_v57, %v915_v47 }
 0x102   : > { %1931 = vmatpush1.bf16.msra.mxu0 %v3960_v34  ;;  %v802_v29 = vpop.permute.xlu0 %801 }
 0x103   : > { %v782_v50 = vpop.permute.xlu1 %781  ;;  %1932 = vmatprep.subr.bf16.mxu0 %v3969_v60  ;;  %v988_v38 = vmax.f32 %v955_v53, 0.0 }
 0x104   : > { %v883_v27 = vmul.f32 %v4557_v45, %v782_v50  ;;  %634 = vperm.xlu1 %4203, %v4508_v31  }
 0x106   : > { %v916_v55 = vadd.f32 %v883_v27, %v713_v52  ;;  %1933 = vmatpush1.bf16.msra.mxu0 %v3968_v62  ;;  %v514_v52 = vmul.f32 %v4552_v44, %v4637_v3  ;;  %v810_v58 = vpop.permute.xlu0 %809 }
 0x107   : > { %1934 = vmatprep.subr.bf16.mxu0 %v3977_v25 }
 0x108   : > { %v956_v61 = vadd.f32 %v4573_v57, %v916_v55  ;;  %4204 = vset.pattern.permute.xlu1 %v4309_v0  ;;  %v393_v41 = vpop.permute.xlu1 %392 }
 0x109   : > { %837 = vperm.xlu1 %4204, %v4508_v31   ;;  %v511_v12 = vmul.f32 %v4552_v44, %v393_v41 }
 0x10a   : > { %v989_v63 = vmax.f32 %v956_v61, 0.0  ;;  %1935 = vmatpush1.bf16.msra.mxu0 %v3976_v5 }
 0x10b   : > { %1936 = vmatprep.subr.bf16.mxu0 %v3985_v13 }
 0x10c   : > { %v1016_v4 = vpack.c.bf16 %v989_v63, %v988_v38  ;;  %v4783_v38 = vpop.permute.xlu0 %817 }
 0x10d   : > { %4205 = vset.pattern.permute.xlu1 %v4311_v6  ;;  %v583_v7 = vpop.permute.xlu1 %582 }
 0x10e   : > { %v681_v31 = vmul.f32 %v4547_v43, %v583_v7  ;;  %462 = vperm.xlu1 %4205, %v4528_v35   ;;  %4046 = vmatmul.mubr.msk.bf16.gmra.mrb[20].mxu0 %vm1067_vm1, %v1016_v4  ;;  %v888_v4 = vmul.f32 %v4557_v45, %v802_v29 }
 0x10f   : > { %4049 = vmatprep.mubr.msk.bf16.mxu0 %vm4313_vm0, %v4312_v8  ;;  %1937 = vmatpush1.bf16.msra.mxu0 %v3984_v28 }
 0x110   : > { %v714_v30 = vadd.f32 %v681_v31, %v511_v12  ;;  %v1341_v12 = vld [vmem:[%s5377_s5 + $0x20] sm:$0xff] }
 0x111   : > { %v587_v16 = vpop.permute.xlu1 %586  ;;  %v3927_v28 = vcombine.high %v1337_v11, %v1341_v12 }
 0x112   : > { %4207 = vset.pattern.permute.xlu1 %v4310_v1  ;;  %v682_v18 = vmul.f32 %v4547_v43, %v587_v16  ;;  %v917_v19 = vadd.f32 %v884_v14, %v714_v30 }
 0x113   : > { %638 = vperm.xlu1 %4207, %v4528_v35   ;;  %1721 = vmatprep.subr.bf16.mxu1 %v3927_v28 }
 0x114   : > { %v715_v22 = vadd.f32 %v682_v18, %v512_v17  ;;  %v957_v36 = vadd.f32 %v4573_v57, %v917_v19 }
 0x116   : > { %v790_v20 = vpop.permute.xlu1 %789  ;;  %v990_v21 = vmax.f32 %v957_v36, 0.0 }
 0x117   : > { %v885_v23 = vmul.f32 %v4557_v45, %v790_v20  ;;  %642 = vperm.xlu1 %4207, %v4512_v32  }
 0x119   : > { %v918_v37 = vadd.f32 %v885_v23, %v715_v22 }
 0x11b   : > { %v958_v39 = vadd.f32 %v4573_v57, %v918_v37  ;;  %4208 = vset.pattern.permute.xlu1 %v4309_v0  ;;  %v403_v59 = vpop.permute.xlu1 %402 }
 0x11c   : > { %845 = vperm.xlu1 %4208, %v4512_v32   ;;  %v513_v48 = vmul.f32 %v4552_v44, %v403_v59  ;;  %v886_v32 = vmul.f32 %v4557_v45, %v794_v46 }
 0x11d   : > { %v991_v35 = vmax.f32 %v958_v39, 0.0  ;;  %v890_v39 = vmul.f32 %v4557_v45, %v810_v58  ;;  %v1353_v58 = vld [vmem:[%s5377_s5 + $0x80] sm:$0xff] }
 0x11f   : > { %v1017_v42 = vpack.c.bf16 %v991_v35, %v990_v21 }
 0x120   : > { %4209 = vset.pattern.permute.xlu1 %v4311_v6  ;;  %v591_v26 = vpop.permute.xlu1 %590 }
 0x121   : > { %v683_v47 = vmul.f32 %v4547_v43, %v591_v26  ;;  %472 = vperm.xlu1 %4209, %v4537_v40   ;;  %4050 = vmatmul.mubr.msk.bf16.gmra.mrb[24].mxu0 %vm1067_vm1, %v1017_v42 }
 0x122   : > { %4053 = vmatprep.mubr.msk.bf16.mxu0 %vm4313_vm0, %v4312_v8 }
 0x123   : > { %v716_v49 = vadd.f32 %v683_v47, %v513_v48 }
 0x124   : > { %v595_v50 = vpop.permute.xlu1 %594 }
 0x125   : > { %4210 = vset.pattern.permute.xlu1 %v4310_v1  ;;  %v684_v27 = vmul.f32 %v4547_v43, %v595_v50  ;;  %v919_v34 = vadd.f32 %v886_v32, %v716_v49 }
 0x126   : > { %646 = vperm.xlu1 %4210, %v4537_v40  }
 0x127   : > { %v717_v55 = vadd.f32 %v684_v27, %v514_v52  ;;  %v959_v60 = vadd.f32 %v4573_v57, %v919_v34  ;;  %v3926_v34 = vcombine.low %v1337_v11, %v1341_v12  ;;  %v1373_v11 = vld [vmem:[%s5377_s5 + $0x120] sm:$0xff] }
 0x129   : > { %v798_v53 = vpop.permute.xlu1 %797  ;;  %v992_v62 = vmax.f32 %v959_v60, 0.0  ;;  %v1357_v60 = vld [vmem:[%s5377_s5 + $0xa0] sm:$0xff] }
 0x12a   : > { %v887_v56 = vmul.f32 %v4557_v45, %v798_v53  ;;  %650 = vperm.xlu1 %4210, %v4564_v51  }
 0x12c   : > { %v920_v61 = vadd.f32 %v887_v56, %v717_v55 }
 0x12e   : > { %v960_v41 = vadd.f32 %v4573_v57, %v920_v61  ;;  %4212 = vset.pattern.permute.xlu1 %v4309_v0  ;;  %v413_v3 = vpop.permute.xlu1 %412 }
 0x12f   : > { %853 = vperm.xlu1 %4212, %v4564_v51   ;;  %v515_v25 = vmul.f32 %v4552_v44, %v413_v3  ;;  %v418_v51 = vpop.permute.xlu0 %417 }
 0x130   : > { %v993_v40 = vmax.f32 %v960_v41, 0.0  ;;  %v516_v31 = vmul.f32 %v4552_v44, %v418_v51  ;;  %v1365_v51 = vld [vmem:[%s5377_s5 + $0xe0] sm:$0xff] }
 0x132   : > { %v1018_v63 = vpack.c.bf16 %v993_v40, %v992_v62  ;;  %v3943_v40 = vcombine.high %v1353_v58, %v1357_v60 }
 0x133   : > { %4213 = vset.pattern.permute.xlu1 %v4311_v6  ;;  %v599_v2 = vpop.permute.xlu1 %598  ;;  %v428_v37 = vpop.permute.xlu0 %427 }
 0x134   : > { %v685_v33 = vmul.f32 %v4547_v43, %v599_v2  ;;  %482 = vperm.xlu1 %4213, %v4600_v24   ;;  %4054 = vmatmul.mubr.msk.bf16.gmra.mrb[28].mxu0 %vm1067_vm1, %v1018_v63  ;;  %v518_v21 = vmul.f32 %v4552_v44, %v428_v37  ;;  %v892_v63 = vmul.f32 %v4557_v45, %v4783_v38 }
 0x135   : > { %4057 = vmatprep.mubr.msk.bf16.mxu0 %vm4313_vm0, %v4312_v8 }
 0x136   : > { %v718_v5 = vadd.f32 %v685_v33, %v515_v25  ;;  %v1361_v25 = vld [vmem:[%s5377_s5 + $0xc0] sm:$0xff] }
 0x137   : > { %v603_v7 = vpop.permute.xlu1 %602  ;;  %v438_v29 = vpop.permute.xlu0 %437 }
 0x138   : > { %4214 = vset.pattern.permute.xlu1 %v4310_v1  ;;  %v686_v9 = vmul.f32 %v4547_v43, %v603_v7  ;;  %v921_v10 = vadd.f32 %v888_v4, %v718_v5  ;;  %v520_v4 = vmul.f32 %v4552_v44, %v438_v29  ;;  %v3942_v7 = vcombine.low %v1353_v58, %v1357_v60 }
 0x139   : > { %654 = vperm.xlu1 %4214, %v4600_v24  }
 0x13a   : > { %v719_v30 = vadd.f32 %v686_v9, %v516_v31  ;;  %v961_v14 = vadd.f32 %v4573_v57, %v921_v10  ;;  %v3951_v31 = vcombine.high %v1361_v25, %v1365_v51  ;;  %v1369_v10 = vld [vmem:[%s5377_s5 + $0x100] sm:$0xff] }
 0x13b   : > { %v4838_v3 = vpop.permute.xlu0 %447 }
 0x13c   : > { %v806_v13 = vpop.permute.xlu1 %805  ;;  %v994_v18 = vmax.f32 %v961_v14, 0.0 }
 0x13d   : > { %v889_v1 = vmul.f32 %v4557_v45, %v806_v13  ;;  %658 = vperm.xlu1 %4214, %v4588_v15  }
 0x13f   : > { %v922_v24 = vadd.f32 %v889_v1, %v719_v30  ;;  %v4852_v38 = vpop.permute.xlu0 %457  ;;  %v3950_v30 = vcombine.low %v1361_v25, %v1365_v51  ;;  %v3959_v1 = vcombine.high %v1369_v10, %v1373_v11 }
 0x141   : > { %v962_v16 = vadd.f32 %v4573_v57, %v922_v24  ;;  %4216 = vset.pattern.permute.xlu1 %v4309_v0  ;;  %v423_v17 = vpop.permute.xlu1 %422 }
 0x142   : > { %861 = vperm.xlu1 %4216, %v4588_v15   ;;  %v517_v36 = vmul.f32 %v4552_v44, %v423_v17  ;;  %v1381_v17 = vld [vmem:[%s5377_s5 + $0x160] sm:$0xff] }
 0x143   : > { %v995_v19 = vmax.f32 %v962_v16, 0.0  ;;  %v1377_v16 = vld [vmem:[%s5377_s5 + $0x140] sm:$0xff] }
 0x145   : > { %v1019_v20 = vpack.c.bf16 %v995_v19, %v994_v18 }
 0x146   : > { %4217 = vset.pattern.permute.xlu1 %v4311_v6  ;;  %v607_v22 = vpop.permute.xlu1 %606 }
 0x147   : > { %v687_v23 = vmul.f32 %v4547_v43, %v607_v22  ;;  %492 = vperm.xlu1 %4217, %v4623_v54   ;;  %4058 = vmatmul.mubr.msk.bf16.gmra.mrb[32].mxu0 %vm1067_vm1, %v1019_v20  ;;  %v4869_v20 = vpop.permute.xlu0 %467  ;;  %v3958_v22 = vcombine.low %v1369_v10, %v1373_v11 }
 0x148   : > { %1954 = vmatprep.mubr.bf16.mxu0 %v4311_v6 }
 0x149   : > { %v720_v15 = vadd.f32 %v687_v23, %v517_v36  ;;  %v3967_v23 = vcombine.high %v1377_v16, %v1381_v17 }
 0x14a   : > { %v611_v59 = vpop.permute.xlu1 %610 }
 0x14b   : > { %4219 = vset.pattern.permute.xlu1 %v4309_v0  ;;  %v688_v35 = vmul.f32 %v4547_v43, %v611_v59  ;;  %v923_v42 = vadd.f32 %v890_v39, %v720_v15  ;;  %v1345_v0 = vld [vmem:[%s5377_s5 + $0x40] sm:$0xff] }
 0x14c   : > { %865 = vperm.xlu1 %4219, %v4623_v54   ;;  %v1349_v54 = vld [vmem:[%s5377_s5 + $0x60] sm:$0xff] }
 0x14d   : > { %v721_v46 = vadd.f32 %v688_v35, %v518_v21  ;;  %v963_v48 = vadd.f32 %v4573_v57, %v923_v42  ;;  %v3935_v55 = vcombine.high %v1345_v0, %v1349_v54  ;;  %v3934_v62 = vcombine.low %v1345_v0, %v1349_v54  ;;  %v1385_v39 = vld [vmem:[%s5377_s5 + $0x180] sm:$0xff] }
 0x14e   : > { %v1389_v15 = vld [vmem:[%s5377_s5 + $0x1a0] sm:$0xff]  ;;  %v3966_v21 = vcombine.low %v1377_v16, %v1381_v17 }
 0x14f   : > { %v814_v26 = vpop.permute.xlu1 %813  ;;  %v996_v52 = vmax.f32 %v963_v48, 0.0  ;;  %v3975_v42 = vcombine.high %v1385_v39, %v1389_v15  ;;  %v1397_v48 = vld [vmem:[%s5377_s5 + $0x1e0] sm:$0xff] }
 0x150   : > { %v891_v47 = vmul.f32 %v4557_v45, %v814_v26 }
 0x152   : > { %v924_v49 = vadd.f32 %v891_v47, %v721_v46  ;;  %v826_v46 = vpop.permute.xlu0 %825  ;;  %v1393_v47 = vld [vmem:[%s5377_s5 + $0x1c0] sm:$0xff] }
 0x153   : > { %v894_v29 = vmul.f32 %v4557_v45, %v826_v46  ;;  %v3983_v54 = vcombine.high %v1393_v47, %v1397_v48 }
 0x154   : > { %v964_v32 = vadd.f32 %v4573_v57, %v924_v49  ;;  %v433_v50 = vpop.permute.xlu1 %432 }
 0x155   : > { %v519_v41 = vmul.f32 %v4552_v44, %v433_v50 }
 0x156   : > { %v997_v27 = vmax.f32 %v964_v32, 0.0  ;;  %v3974_v32 = vcombine.low %v1385_v39, %v1389_v15  ;;  %v834_v25 = vpop.permute.xlu0 %833 }
 0x158   : > { %v1020_v53 = vpack.c.bf16 %v997_v27, %v996_v52  ;;  %v522_v52 = vmul.f32 %v4552_v44, %v4838_v3 }
 0x159   : > { %v615_v56 = vpop.permute.xlu1 %614 }
 0x15a   : > { %v689_v61 = vmul.f32 %v4547_v43, %v615_v56  ;;  %4062 = vmatmul.mubr.msk.bf16.vlgmr.msra.gmra.mrb[0].mxu1 %vm1067_vm1, %v1020_v53 }
 0x15b   : > { %4065 = vmatprep.mubr.msk.bf16.mxu1 %vm4313_vm0, %v4312_v8  ;;  %1722 = vmatpush1.bf16.msra.mxu1 %v3926_v34  ;;  %v3982_v34 = vcombine.low %v1393_v47, %v1397_v48 }
 0x15c   : > { %1723 = vmatprep.subr.bf16.mxu1 %v3935_v55  ;;  %v722_v2 = vadd.f32 %v689_v61, %v519_v41 }
 0x15d   : > { %v619_v33 = vpop.permute.xlu1 %618 }
 0x15e   : > { %v690_v5 = vmul.f32 %v4547_v43, %v619_v33  ;;  %v925_v9 = vadd.f32 %v892_v63, %v722_v2 }
 0x15f   : > { %1724 = vmatpush1.bf16.msra.mxu1 %v3934_v62 }
 0x160   : > { %1725 = vmatprep.subr.bf16.mxu1 %v3943_v40  ;;  %v723_v13 = vadd.f32 %v690_v5, %v520_v4  ;;  %v965_v14 = vadd.f32 %v4573_v57, %v925_v9  ;;  %v896_v5 = vmul.f32 %v4557_v45, %v834_v25  ;;  %v4946_v25 = vld [vmem:[%s5373_s1] ss:$0 sm:$0xff] }
 0x162   : > { %v822_v12 = vpop.permute.xlu1 %821  ;;  %v998_v36 = vmax.f32 %v965_v14, 0.0 }
 0x163   : > { %v893_v28 = vmul.f32 %v4557_v45, %v822_v12  ;;  %1726 = vmatpush1.bf16.msra.mxu1 %v3942_v7 }
 0x164   : > { %1727 = vmatprep.subr.bf16.mxu1 %v3951_v31  ;;  %v524_v31 = vmul.f32 %v4552_v44, %v4852_v38 }
 0x165   : > { %v926_v24 = vadd.f32 %v893_v28, %v723_v13  ;;  %v4908_v28 = vld [vmem:[%s5376_s4] ss:$0 sm:$0xff] }
 0x167   : > { %v966_v18 = vadd.f32 %v4573_v57, %v926_v24  ;;  %v443_v19 = vpop.permute.xlu1 %442  ;;  %1728 = vmatpush1.bf16.msra.mxu1 %v3950_v30 }
 0x168   : > { %1729 = vmatprep.subr.bf16.mxu1 %v3959_v1  ;;  %v521_v49 = vmul.f32 %v4552_v44, %v443_v19 }
 0x169   : > { %v999_v37 = vmax.f32 %v966_v18, 0.0 }
 0x16b   : > { %v1021_v59 = vpack.c.bf16 %v999_v37, %v998_v36  ;;  %1730 = vmatpush1.bf16.msra.mxu1 %v3958_v22 }
 0x16c   : > { %v623_v35 = vpop.permute.xlu1 %622  ;;  %1731 = vmatprep.subr.bf16.mxu1 %v3967_v23 }
 0x16d   : > { %v691_v26 = vmul.f32 %v4547_v43, %v623_v35  ;;  %4066 = vmatmul.mubr.msk.bf16.gmra.mrb[4].mxu1 %vm1067_vm1, %v1021_v59 }
 0x16e   : > { %4069 = vmatprep.mubr.msk.bf16.mxu1 %vm4313_vm0, %v4312_v8 }
 0x16f   : > { %1732 = vmatpush1.bf16.msra.mxu1 %v3966_v21  ;;  %v724_v50 = vadd.f32 %v691_v26, %v521_v49 }
 0x170   : > { %v627_v0 = vpop.permute.xlu1 %626  ;;  %1733 = vmatprep.subr.bf16.mxu1 %v3975_v42  ;;  %v842_v42 = vpop.permute.xlu0 %841 }
 0x171   : > { %v692_v27 = vmul.f32 %v4547_v43, %v627_v0  ;;  %v927_v53 = vadd.f32 %v894_v29, %v724_v50  ;;  %v898_v48 = vmul.f32 %v4557_v45, %v842_v42  ;;  %v4981_v42 = vld [vmem:[%s5377_s5 + $0x30] sm:$0xff] }
 0x173   : > { %1734 = vmatpush1.bf16.msra.mxu1 %v3974_v32  ;;  %v725_v56 = vadd.f32 %v692_v27, %v522_v52  ;;  %v967_v60 = vadd.f32 %v4573_v57, %v927_v53  ;;  %v526_v27 = vmul.f32 %v4552_v44, %v4869_v20 }
 0x174   : > { %1735 = vmatprep.subr.bf16.mxu1 %v3983_v54 }
 0x175   : > { %v830_v55 = vpop.permute.xlu1 %829  ;;  %v1000_v40 = vmax.f32 %v967_v60, 0.0 }
 0x176   : > { %v895_v58 = vmul.f32 %v4557_v45, %v830_v55 }
 0x177   : > { %1736 = vmatpush1.bf16.msra.mxu1 %v3982_v34 }
 0x178   : > { %v928_v61 = vadd.f32 %v895_v58, %v725_v56 }
 0x17a   : > { %v968_v41 = vadd.f32 %v4573_v57, %v928_v61  ;;  %v453_v62 = vpop.permute.xlu1 %452 }
 0x17b   : > { %v523_v51 = vmul.f32 %v4552_v44, %v453_v62 }
 0x17c   : > { %v1001_v63 = vmax.f32 %v968_v41, 0.0 }
 0x17e   : > { %v1022_v3 = vpack.c.bf16 %v1001_v63, %v1000_v40 }
 0x17f   : > { %v631_v2 = vpop.permute.xlu1 %630 }
 0x180   : > { %v693_v33 = vmul.f32 %v4547_v43, %v631_v2  ;;  %4070 = vmatmul.mubr.msk.bf16.gmra.mrb[8].mxu1 %vm1067_vm1, %v1022_v3  ;;  %v850_v3 = vpop.permute.xlu0 %849 }
 0x181   : > { %4073 = vmatprep.mubr.msk.bf16.mxu1 %vm4313_vm0, %v4312_v8 }
 0x182   : > { %v726_v4 = vadd.f32 %v693_v33, %v523_v51  ;;  %v4939_v33 = vld [vmem:[%s5373_s1 + $0x1] ss:$0 sm:$0xff] }
 0x183   : > { %v635_v7 = vpop.permute.xlu1 %634 }
 0x184   : > { %v694_v9 = vmul.f32 %v4547_v43, %v635_v7  ;;  %v929_v10 = vadd.f32 %v896_v5, %v726_v4  ;;  %v478_v4 = vpop.permute.xlu0 %477 }
 0x186   : > { %v727_v12 = vadd.f32 %v694_v9, %v524_v31  ;;  %v969_v30 = vadd.f32 %v4573_v57, %v929_v10 }
 0x188   : > { %v838_v11 = vpop.permute.xlu1 %837  ;;  %v1002_v19 = vmax.f32 %v969_v30, 0.0 }
 0x189   : > { %v897_v13 = vmul.f32 %v4557_v45, %v838_v11  ;;  %v4955_v11 = vld [vmem:[%s5373_s1 + $0x2] ss:$0 sm:$0xff] }
 0x18b   : > { %v930_v1 = vadd.f32 %v897_v13, %v727_v12  ;;  %v900_v12 = vmul.f32 %v4955_v11, %v850_v3  ;;  %v528_v13 = vmul.f32 %v4946_v25, %v478_v4  ;;  %v1348_v4 = vld [vmem:[%s5377_s5 + $0x58] sm:$0xff] }
 0x18c   : > { %v1153_v14 = vpop.f32.mrb[0].mxu0 }
 0x18d   : > { %v970_v24 = vadd.f32 %v4573_v57, %v930_v1  ;;  %v1154_v38 = vadd.f32 %v4908_v28, %v1153_v14  ;;  %v4027_v16 = vpop.f32.mrb[1].mxu0  ;;  %v463_v17 = vpop.permute.xlu1 %462 }
 0x18e   : > { %v1156_v18 = vpop.f32.mrb[2].mxu0  ;;  %v525_v26 = vmul.f32 %v4552_v44, %v463_v17 }
 0x18f   : > { %v1003_v22 = vmax.f32 %v970_v24, 0.0  ;;  %v1157_v23 = vadd.f32 %v4908_v28, %v1156_v18  ;;  %v4028_v36 = vpop.f32.mrb[3].mxu0  ;;  %v1287_v39 = vmax.f32 %v1154_v38, 0.0 }
 0x191   : > { %v1023_v37 = vpack.c.bf16 %v1003_v22, %v1002_v19  ;;  %v1288_v15 = vmax.f32 %v1157_v23, 0.0  ;;  %v4967_v23 = vld [vmem:[%s5374_s2] ss:$0 sm:$0xff] }
 0x192   : > { %v639_v59 = vpop.permute.xlu1 %638 }
 0x193   : > { %v4914_v21 = vpack.c.bf16 %v1288_v15, %v1287_v39  ;;  %v695_v35 = vmul.f32 %v4547_v43, %v639_v59  ;;  %4074 = vmatmul.mubr.msk.bf16.gmra.mrb[12].mxu1 %vm1067_vm1, %v1023_v37  ;;  %v488_v59 = vpop.permute.xlu0 %487 }
 0x194   : > { %4077 = vmatprep.mubr.msk.bf16.mxu1 %vm4313_vm0, %v4312_v8 }
 0x195   : > { %v1161_v46 = vpop.f32.mrb[4].mxu0  ;;  %1955 = vmatmul.mubr.bf16.vlgmr.msra.gmra.mrb[36].mxu0 %v4914_v21  ;;  %v728_v47 = vadd.f32 %v695_v35, %v525_v26  ;;  %v4976_v35 = vld [vmem:[%s5377_s5 + $0x10] sm:$0xff]  ;;  %v1340_v26 = vld [vmem:[%s5377_s5 + $0x18] sm:$0xff] }
 0x196   : > { %v1162_v49 = vadd.f32 %v4908_v28, %v1161_v46  ;;  %v4031_v32 = vpop.f32.mrb[5].mxu0  ;;  %v643_v50 = vpop.permute.xlu1 %642  ;;  %1964 = vmatprep.mubr.bf16.mxu0 %v4311_v6 }
 0x197   : > { %v1164_v29 = vpop.f32.mrb[6].mxu0  ;;  %v696_v0 = vmul.f32 %v4547_v43, %v643_v50  ;;  %v931_v34 = vadd.f32 %v898_v48, %v728_v47  ;;  %v3931_v48 = vcombine.high %v4976_v35, %v4981_v42 }
 0x198   : > { %v1165_v54 = vadd.f32 %v4908_v28, %v1164_v29  ;;  %v4032_v52 = vpop.f32.mrb[7].mxu0  ;;  %v1289_v53 = vmax.f32 %v1162_v49, 0.0  ;;  %v1344_v49 = vld [vmem:[%s5377_s5 + $0x38] sm:$0xff] }
 0x199   : > { %v729_v58 = vadd.f32 %v696_v0, %v526_v27  ;;  %v971_v41 = vadd.f32 %v4573_v57, %v931_v34  ;;  %v3932_v32 = vcombine.low %v1340_v26, %v1344_v49  ;;  %v3933_v50 = vcombine.high %v1340_v26, %v1344_v49  ;;  %2123 = vmatprep.subr.bf16.mxu1 %v3931_v48  ;;  %v858_v52 = vpop.permute.xlu0 %857 }
 0x19a   : > { %v1290_v55 = vmax.f32 %v1165_v54, 0.0 }
 0x19b   : > { %v846_v56 = vpop.permute.xlu1 %845  ;;  %v1004_v44 = vmax.f32 %v971_v41, 0.0  ;;  %2324 = vmatprep.subr.bf16.mxu0 %v3933_v50 }
 0x19c   : > { %v4929_v60 = vpack.c.bf16 %v1290_v55, %v1289_v53  ;;  %v899_v61 = vmul.f32 %v4557_v45, %v846_v56  ;;  %2325 = vmatpush1.bf16.msra.mxu0 %v3932_v32  ;;  %v902_v55 = vmul.f32 %v4955_v11, %v858_v52 }
 0x19e   : > { %v932_v62 = vadd.f32 %v899_v61, %v729_v58  ;;  %1965 = vmatmul.mubr.bf16.gmra.mrb[40].mxu0 %v4929_v60 }
 0x19f   : > { %1974 = vmatprep.mubr.bf16.mxu0 %v4311_v6 }
 0x1a0   : > { %v972_v43 = vadd.f32 %v4573_v57, %v932_v62  ;;  %v473_v40 = vpop.permute.xlu1 %472 }
 0x1a1   : > { %v527_v57 = vmul.f32 %v4946_v25, %v473_v40 }
 0x1a2   : > { %v1005_v20 = vmax.f32 %v972_v43, 0.0 }
 0x1a4   : > { %v1024_v63 = vpack.c.bf16 %v1005_v20, %v1004_v44  ;;  %v530_v44 = vmul.f32 %v4946_v25, %v488_v59 }
 0x1a5   : > { %v647_v2 = vpop.permute.xlu1 %646 }
 0x1a6   : > { %v697_v45 = vmul.f32 %v4939_v33, %v647_v2  ;;  %4078 = vmatmul.mubr.msk.bf16.gmra.mrb[16].mxu1 %vm1067_vm1, %v1024_v63 }
 0x1a7   : > { %4081 = vmatprep.mubr.msk.bf16.mxu1 %vm4313_vm0, %v4312_v8 }
 0x1a8   : > { %v1169_v51 = vpop.f32.mrb[8].mxu0  ;;  %v730_v5 = vadd.f32 %v697_v45, %v527_v57 }
 0x1a9   : > { %v1170_v7 = vadd.f32 %v4908_v28, %v1169_v51  ;;  %v4035_v31 = vpop.f32.mrb[9].mxu0  ;;  %v651_v9 = vpop.permute.xlu1 %650 }
 0x1aa   : > { %v1172_v10 = vpop.f32.mrb[10].mxu0  ;;  %v698_v30 = vmul.f32 %v4939_v33, %v651_v9  ;;  %v933_v24 = vadd.f32 %v900_v12, %v730_v5  ;;  %v1352_v31 = vld [vmem:[%s5377_s5 + $0x78] sm:$0xff]  ;;  %v663_v9 = vpop.permute.xlu0 %662 }
 0x1ab   : > { %v1173_v1 = vadd.f32 %v4908_v28, %v1172_v10  ;;  %v4036_v14 = vpop.f32.mrb[11].mxu0  ;;  %v1291_v38 = vmax.f32 %v1170_v7, 0.0  ;;  %v3940_v10 = vcombine.low %v1348_v4, %v1352_v31  ;;  %v3941_v12 = vcombine.high %v1348_v4, %v1352_v31  ;;  %v1371_v31 = vld [vmem:[%s5377_s5 + $0x110] sm:$0xff] }
 0x1ac   : > { %v731_v18 = vadd.f32 %v698_v30, %v528_v13  ;;  %v973_v36 = vadd.f32 %v4967_v23, %v933_v24  ;;  %v701_v24 = vmul.f32 %v4939_v33, %v663_v9  ;;  %v1375_v9 = vld [vmem:[%s5377_s5 + $0x130] sm:$0xff] }
 0x1ad   : > { %v1292_v16 = vmax.f32 %v1173_v1, 0.0  ;;  %2326 = vmatprep.subr.bf16.mxu0 %v3941_v12 }
 0x1ae   : > { %v854_v17 = vpop.permute.xlu1 %853  ;;  %v1006_v46 = vmax.f32 %v973_v36, 0.0  ;;  %2327 = vmatpush1.bf16.msra.mxu0 %v3940_v10  ;;  %v1372_v10 = vld [vmem:[%s5377_s5 + $0x118] sm:$0xff] }
 0x1af   : > { %v4961_v19 = vpack.c.bf16 %v1292_v16, %v1291_v38  ;;  %v901_v22 = vmul.f32 %v4955_v11, %v854_v17  ;;  %v1356_v16 = vld [vmem:[%s5377_s5 + $0x98] sm:$0xff] }
 0x1b1   : > { %v934_v37 = vadd.f32 %v901_v22, %v731_v18  ;;  %1975 = vmatmul.mubr.bf16.gmra.mrb[44].mxu0 %v4961_v19  ;;  %v1360_v18 = vld [vmem:[%s5377_s5 + $0xb8] sm:$0xff] }
 0x1b2   : > { %1984 = vmatprep.mubr.bf16.mxu0 %v4311_v6  ;;  %v3948_v36 = vcombine.low %v1356_v16, %v1360_v18 }
 0x1b3   : > { %v974_v39 = vadd.f32 %v4967_v23, %v934_v37  ;;  %v483_v15 = vpop.permute.xlu1 %482  ;;  %v3949_v37 = vcombine.high %v1356_v16, %v1360_v18 }
 0x1b4   : > { %v529_v27 = vmul.f32 %v4946_v25, %v483_v15 }
 0x1b5   : > { %v1007_v47 = vmax.f32 %v974_v39, 0.0  ;;  %2328 = vmatprep.subr.bf16.mxu0 %v3949_v37 }
 0x1b6   : > { %2329 = vmatpush1.bf16.msra.mxu0 %v3948_v36 }
 0x1b7   : > { %v1025_v29 = vpack.c.bf16 %v1007_v47, %v1006_v46 }
 0x1b8   : > { %v655_v0 = vpop.permute.xlu1 %654 }
 0x1b9   : > { %v699_v54 = vmul.f32 %v4939_v33, %v655_v0  ;;  %4082 = vmatmul.mubr.msk.bf16.gmra.mrb[20].mxu1 %vm1067_vm1, %v1025_v29 }
 0x1ba   : > { %4085 = vmatprep.mubr.msk.bf16.mxu1 %vm4313_vm0, %v4312_v8 }
 0x1bb   : > { %v1177_v34 = vpop.f32.mrb[12].mxu0  ;;  %v732_v53 = vadd.f32 %v699_v54, %v529_v27  ;;  %v3930_v54 = vcombine.low %v4976_v35, %v4981_v42  ;;  %v1364_v27 = vld [vmem:[%s5377_s5 + $0xd8] sm:$0xff] }
 0x1bc   : > { %v1178_v56 = vadd.f32 %v4908_v28, %v1177_v34  ;;  %v4039_v58 = vpop.f32.mrb[13].mxu0  ;;  %v659_v61 = vpop.permute.xlu1 %658  ;;  %v1355_v34 = vld [vmem:[%s5377_s5 + $0x90] sm:$0xff] }
 0x1bd   : > { %v1180_v41 = vpop.f32.mrb[14].mxu0  ;;  %v700_v62 = vmul.f32 %v4939_v33, %v659_v61  ;;  %v935_v20 = vadd.f32 %v902_v55, %v732_v53  ;;  %v1359_v53 = vld [vmem:[%s5377_s5 + $0xb0] sm:$0xff]  ;;  %v1368_v55 = vld [vmem:[%s5377_s5 + $0xf8] sm:$0xff] }
 0x1be   : > { %v1181_v43 = vadd.f32 %v4908_v28, %v1180_v41  ;;  %v4040_v40 = vpop.f32.mrb[15].mxu0  ;;  %v1293_v63 = vmax.f32 %v1178_v56, 0.0  ;;  %v3956_v35 = vcombine.low %v1364_v27, %v1368_v55  ;;  %v3957_v42 = vcombine.high %v1364_v27, %v1368_v55  ;;  %v1363_v41 = vld [vmem:[%s5377_s5 + $0xd0] sm:$0xff] }
 0x1bf   : > { %v733_v45 = vadd.f32 %v700_v62, %v530_v44  ;;  %v975_v5 = vadd.f32 %v4967_v23, %v935_v20  ;;  %v3947_v58 = vcombine.high %v1355_v34, %v1359_v53  ;;  %v1367_v62 = vld [vmem:[%s5377_s5 + $0xf0] sm:$0xff]  ;;  %v3946_v20 = vcombine.low %v1355_v34, %v1359_v53  ;;  %v1388_v34 = vld [vmem:[%s5377_s5 + $0x198] sm:$0xff] }
 0x1c0   : > { %v1294_v3 = vmax.f32 %v1181_v43, 0.0  ;;  %2330 = vmatprep.subr.bf16.mxu0 %v3957_v42  ;;  %v3954_v4 = vcombine.low %v1363_v41, %v1367_v62  ;;  %v1391_v27 = vld [vmem:[%s5377_s5 + $0x1b0] sm:$0xff] }
 0x1c1   : > { %v862_v2 = vpop.permute.xlu1 %861  ;;  %v1008_v1 = vmax.f32 %v975_v5, 0.0  ;;  %2331 = vmatpush1.bf16.msra.mxu0 %v3956_v35  ;;  %v1392_v35 = vld [vmem:[%s5377_s5 + $0x1b8] sm:$0xff] }
 0x1c2   : > { %v5001_v57 = vpack.c.bf16 %v1294_v3, %v1293_v63  ;;  %v903_v51 = vmul.f32 %v4955_v11, %v862_v2  ;;  %v3955_v2 = vcombine.high %v1363_v41, %v1367_v62  ;;  %v3980_v42 = vcombine.low %v1388_v34, %v1392_v35 }
 0x1c4   : > { %v936_v7 = vadd.f32 %v903_v51, %v733_v45  ;;  %1985 = vmatmul.mubr.bf16.gmra.mrb[48].mxu0 %v5001_v57 }
 0x1c5   : > { %1994 = vmatprep.mubr.bf16.mxu0 %v4311_v6 }
 0x1c6   : > { %v976_v13 = vadd.f32 %v4967_v23, %v936_v7  ;;  %v493_v30 = vpop.permute.xlu1 %492 }
 0x1c7   : > { %v531_v38 = vmul.f32 %v4946_v25, %v493_v30  ;;  %v3962_v30 = vcombine.low %v1371_v31, %v1375_v9 }
 0x1c8   : > { %v1009_v14 = vmax.f32 %v976_v13, 0.0 }
 0x1c9   : > { %v734_v39 = vadd.f32 %v701_v24, %v531_v38 }
 0x1ca   : > { %v1026_v17 = vpack.c.bf16 %v1009_v14, %v1008_v1  ;;  %v3963_v1 = vcombine.high %v1371_v31, %v1375_v9  ;;  %v1376_v14 = vld [vmem:[%s5377_s5 + $0x138] sm:$0xff] }
 0x1cb   : > { %v866_v22 = vpop.permute.xlu1 %865  ;;  %v3964_v38 = vcombine.low %v1372_v10, %v1376_v14  ;;  %v3965_v16 = vcombine.high %v1372_v10, %v1376_v14 }
 0x1cc   : > { %v904_v15 = vmul.f32 %v4955_v11, %v866_v22  ;;  %4086 = vmatmul.mubr.msk.bf16.gmra.mrb[24].mxu1 %vm1067_vm1, %v1026_v17 }
 0x1cd   : > { %4089 = vmatprep.mubr.msk.bf16.mxu1 %vm4313_vm0, %v4312_v8  ;;  %v1347_v8 = vld [vmem:[%s5377_s5 + $0x50] sm:$0xff]  ;;  %2332 = vmatprep.subr.bf16.mxu0 %v3965_v16 }
 0x1ce   : > { %v937_v33 = vadd.f32 %v904_v15, %v734_v39  ;;  %v1185_v25 = vpop.f32.mrb[16].mxu0  ;;  %2333 = vmatpush1.bf16.msra.mxu0 %v3964_v38  ;;  %v1379_v39 = vld [vmem:[%s5377_s5 + $0x150] sm:$0xff] }
 0x1cf   : > { %v1186_v59 = vadd.f32 %v4908_v28, %v1185_v25  ;;  %v4043_v26 = vpop.f32.mrb[17].mxu0  ;;  %v1383_v15 = vld [vmem:[%s5377_s5 + $0x170] sm:$0xff] }
 0x1d0   : > { %v977_v46 = vadd.f32 %v4967_v23, %v937_v33  ;;  %v1188_v47 = vpop.f32.mrb[18].mxu0  ;;  %v1351_v23 = vld [vmem:[%s5377_s5 + $0x70] sm:$0xff]  ;;  %v1380_v33 = vld [vmem:[%s5377_s5 + $0x158] sm:$0xff]  ;;  %v3970_v25 = vcombine.low %v1379_v39, %v1383_v15 }
 0x1d1   : > { %v1189_v48 = vadd.f32 %v4908_v28, %v1188_v47  ;;  %v4044_v49 = vpop.f32.mrb[19].mxu0  ;;  %v1295_v11 = vmax.f32 %v1186_v59, 0.0  ;;  %v3939_v52 = vcombine.high %v1347_v8, %v1351_v23  ;;  %v3938_v56 = vcombine.low %v1347_v8, %v1351_v23  ;;  %v1384_v26 = vld [vmem:[%s5377_s5 + $0x178] sm:$0xff] }
 0x1d2   : > { %v1010_v32 = vmax.f32 %v977_v46, 0.0  ;;  %v3971_v59 = vcombine.high %v1379_v39, %v1383_v15  ;;  %v3972_v47 = vcombine.low %v1380_v33, %v1384_v26 }
 0x1d3   : > { %v1296_v50 = vmax.f32 %v1189_v48, 0.0  ;;  %v3973_v48 = vcombine.high %v1380_v33, %v1384_v26 }
 0x1d4   : > { %v1027_v29 = vpack.c.bf16 %v1010_v32, %v1010_v32 }
 0x1d5   : > { %v5029_v0 = vpack.c.bf16 %v1296_v50, %v1295_v11  ;;  %2334 = vmatprep.subr.bf16.mxu0 %v3973_v48 }
 0x1d6   : > { %4090 = vmatmul.mubr.msk.bf16.gmra.mrb[28].mxu1 %vm1067_vm1, %v1027_v29  ;;  %2335 = vmatpush1.bf16.msra.mxu0 %v3972_v47 }
 0x1d7   : > { %1995 = vmatmul.mubr.bf16.gmra.mrb[52].mxu0 %v5029_v0  ;;  %1753 = vmatprep.mubr.bf16.mxu1 %v4311_v6 }
 0x1d8   : > { %2004 = vmatprep.mubr.bf16.mxu0 %v4311_v6 }
 0x1de   : > { %1754 = vmatmul.mubr.bf16.vlgmr.msra.gmra.mrb[32].mxu1 %v4914_v21 }
 0x1df   : > { %1763 = vmatprep.mubr.bf16.mxu1 %v4311_v6  ;;  %2124 = vmatpush1.bf16.msra.mxu1 %v3930_v54 }
 0x1e0   : > { %2125 = vmatprep.subr.bf16.mxu1 %v3939_v52  ;;  %v1387_v52 = vld [vmem:[%s5377_s5 + $0x190] sm:$0xff] }
 0x1e1   : > { %v1193_v61 = vpop.f32.mrb[20].mxu0  ;;  %v3978_v53 = vcombine.low %v1387_v52, %v1391_v27  ;;  %v3979_v55 = vcombine.high %v1387_v52, %v1391_v27 }
 0x1e2   : > { %v1194_v43 = vadd.f32 %v4908_v28, %v1193_v61  ;;  %v4047_v40 = vpop.f32.mrb[21].mxu0 }
 0x1e3   : > { %v1196_v44 = vpop.f32.mrb[22].mxu0  ;;  %2126 = vmatpush1.bf16.msra.mxu1 %v3938_v56  ;;  %v3981_v56 = vcombine.high %v1388_v34, %v1392_v35 }
 0x1e4   : > { %v1197_v63 = vadd.f32 %v4908_v28, %v1196_v44  ;;  %v4048_v3 = vpop.f32.mrb[23].mxu0  ;;  %2127 = vmatprep.subr.bf16.mxu1 %v3947_v58  ;;  %v1297_v45 = vmax.f32 %v1194_v43, 0.0 }
 0x1e5   : > { %2336 = vmatprep.subr.bf16.mxu0 %v3981_v56  ;;  %v1395_v3 = vld [vmem:[%s5377_s5 + $0x1d0] sm:$0xff] }
 0x1e6   : > { %v1298_v51 = vmax.f32 %v1197_v63, 0.0  ;;  %1764 = vmatmul.mubr.bf16.gmra.mrb[36].mxu1 %v4929_v60  ;;  %2337 = vmatpush1.bf16.msra.mxu0 %v3980_v42 }
 0x1e7   : > { %1773 = vmatprep.mubr.bf16.mxu1 %v4311_v6  ;;  %2128 = vmatpush1.bf16.msra.mxu1 %v3946_v20 }
 0x1e8   : > { %v5067_v5 = vpack.c.bf16 %v1298_v51, %v1297_v45  ;;  %2129 = vmatprep.subr.bf16.mxu1 %v3955_v2  ;;  %v1399_v2 = vld [vmem:[%s5377_s5 + $0x1f0] sm:$0xff]  ;;  %v1396_v45 = vld [vmem:[%s5377_s5 + $0x1d8] sm:$0xff] }
 0x1e9   : > { %v3986_v51 = vcombine.low %v1395_v3, %v1399_v2 }
 0x1ea   : > { %2005 = vmatmul.mubr.bf16.gmra.mrb[56].mxu0 %v5067_v5 }
 0x1eb   : > { %2014 = vmatprep.mubr.bf16.mxu0 %v4311_v6  ;;  %2130 = vmatpush1.bf16.msra.mxu1 %v3954_v4  ;;  %v3987_v4 = vcombine.high %v1395_v3, %v1399_v2 }
 0x1ec   : > { %2131 = vmatprep.subr.bf16.mxu1 %v3963_v1 }
 0x1ee   : > { %1774 = vmatmul.mubr.bf16.gmra.mrb[40].mxu1 %v4961_v19 }
 0x1ef   : > { %1783 = vmatprep.mubr.bf16.mxu1 %v4311_v6  ;;  %2132 = vmatpush1.bf16.msra.mxu1 %v3962_v30 }
 0x1f0   : > { %2133 = vmatprep.subr.bf16.mxu1 %v3971_v59 }
 0x1f3   : > { %2134 = vmatpush1.bf16.msra.mxu1 %v3970_v25 }
 0x1f4   : > { %v1201_v7 = vpop.f32.mrb[24].mxu0  ;;  %2135 = vmatprep.subr.bf16.mxu1 %v3979_v55 }
 0x1f5   : > { %v1202_v12 = vadd.f32 %v4908_v28, %v1201_v7  ;;  %v4051_v13 = vpop.f32.mrb[25].mxu0  ;;  %v1400_v7 = vld [vmem:[%s5377_s5 + $0x1f8] sm:$0xff] }
 0x1f6   : > { %v1204_v24 = vpop.f32.mrb[26].mxu0  ;;  %1784 = vmatmul.mubr.bf16.gmra.mrb[44].mxu1 %v5001_v57  ;;  %v3988_v31 = vcombine.low %v1396_v45, %v1400_v7  ;;  %v3989_v9 = vcombine.high %v1396_v45, %v1400_v7 }
 0x1f7   : > { %v1205_v17 = vadd.f32 %v4908_v28, %v1204_v24  ;;  %v4052_v18 = vpop.f32.mrb[27].mxu0  ;;  %1793 = vmatprep.mubr.bf16.mxu1 %v4311_v6  ;;  %v1299_v22 = vmax.f32 %v1202_v12, 0.0  ;;  %2136 = vmatpush1.bf16.msra.mxu1 %v3978_v53 }
 0x1f8   : > { %2137 = vmatprep.subr.bf16.mxu1 %v3987_v4  ;;  %2338 = vmatprep.subr.bf16.mxu0 %v3989_v9 }
 0x1f9   : > { %v1300_v36 = vmax.f32 %v1205_v17, 0.0  ;;  %2339 = vmatpush1.bf16.msra.mxu0 %v3988_v31 }
 0x1fb   : > { %v5089_v37 = vpack.c.bf16 %v1300_v36, %v1299_v22  ;;  %2138 = vmatpush1.bf16.msra.mxu1 %v3986_v51 }
 0x1fd   : > { %2015 = vmatmul.mubr.bf16.gmra.mrb[60].mxu0 %v5089_v37 }
 0x1fe   : > { %1794 = vmatmul.mubr.bf16.gmra.mrb[48].mxu1 %v5029_v0  ;;  %2024 = vmatprep.mubr.bf16.mxu0 %v4311_v6 }
 0x1ff   : > { %1803 = vmatprep.mubr.bf16.mxu1 %v4311_v6 }
 0x206   : > { %1804 = vmatmul.mubr.bf16.gmra.mrb[52].mxu1 %v5067_v5 }
 0x207   : > { %v1209_v46 = vpop.f32.mrb[28].mxu0  ;;  %1813 = vmatprep.mubr.bf16.mxu1 %v4311_v6 }
 0x208   : > { %v1210_v49 = vadd.f32 %v4908_v28, %v1209_v46  ;;  %v4055_v32 = vpop.f32.mrb[29].mxu0 }
 0x209   : > { %v1212_v11 = vpop.f32.mrb[30].mxu0 }
 0x20a   : > { %v1213_v50 = vadd.f32 %v4908_v28, %v1212_v11  ;;  %v4056_v29 = vpop.f32.mrb[31].mxu0  ;;  %v1301_v8 = vmax.f32 %v1210_v49, 0.0 }
 0x20c   : > { %v1302_v23 = vmax.f32 %v1213_v50, 0.0 }
 0x20e   : > { %v5111_v54 = vpack.c.bf16 %v1302_v23, %v1301_v8  ;;  %1814 = vmatmul.mubr.bf16.gmra.mrb[56].mxu1 %v5089_v37 }
 0x20f   : > { %1823 = vmatprep.mubr.bf16.mxu1 %v4311_v6 }
 0x210   : > { %2025 = vmatmul.mubr.bf16.gmra.mrb[64].mxu0 %v5111_v54 }
 0x211   : > { %2034 = vmatprep.mubr.bf16.mxu0 %v4311_v6 }
 0x216   : > { %1824 = vmatmul.mubr.bf16.gmra.mrb[60].mxu1 %v5111_v54 }
 0x217   : > { %1833 = vmatprep.mubr.bf16.mxu1 %v4311_v6 }
 0x21a   : > { %v1217_v58 = vpop.f32.mrb[32].mxu0 }
 0x21b   : > { %v1218_v61 = vadd.f32 %v4908_v28, %v1217_v58  ;;  %v4059_v41 = vpop.f32.mrb[33].mxu0 }
 0x21c   : > { %v1220_v62 = vpop.f32.mrb[34].mxu0 }
 0x21d   : > { %v1221_v43 = vadd.f32 %v4908_v28, %v1220_v62  ;;  %v4060_v40 = vpop.f32.mrb[35].mxu0  ;;  %v1303_v44 = vmax.f32 %v1218_v61, 0.0 }
 0x21f   : > { %v1304_v20 = vmax.f32 %v1221_v43, 0.0 }
 0x221   : > { %v5133_v63 = vpack.c.bf16 %v1304_v20, %v1303_v44 }
 0x223   : > { %1834 = vmatmul.mubr.bf16.gmra.mrb[64].mxu1 %v5133_v63  ;;  %2035 = vmatmul.mubr.bf16.gmra.mrb[68].mxu0 %v5133_v63 }
 0x224   : > { %1843 = vmatprep.mubr.bf16.mxu1 %v4311_v6  ;;  %2044 = vmatprep.mubr.bf16.mxu0 %v4311_v6 }
 0x22d   : > { %v1225_v10 = vpop.f32.mrb[0].mxu1 }
 0x22e   : > { %v1226_v12 = vadd.f32 %v4908_v28, %v1225_v10  ;;  %v4063_v13 = vpop.f32.mrb[1].mxu1 }
 0x22f   : > { %v1228_v30 = vpop.f32.mrb[2].mxu1 }
 0x230   : > { %v1229_v1 = vadd.f32 %v4908_v28, %v1228_v30  ;;  %v4064_v14 = vpop.f32.mrb[3].mxu1  ;;  %v1305_v24 = vmax.f32 %v1226_v12, 0.0 }
 0x232   : > { %v1306_v38 = vmax.f32 %v1229_v1, 0.0 }
 0x234   : > { %v5153_v16 = vpack.c.bf16 %v1306_v38, %v1305_v24 }
 0x236   : > { %1844 = vmatmul.mubr.bf16.gmra.mrb[68].mxu1 %v5153_v16  ;;  %2045 = vmatmul.mubr.bf16.gmra.mrb[72].mxu0 %v5153_v16 }
 0x237   : > { %1853 = vmatprep.mubr.bf16.mxu1 %v4311_v6  ;;  %2054 = vmatprep.mubr.bf16.mxu0 %v4311_v6 }
 0x240   : > { %v1233_v17 = vpop.f32.mrb[4].mxu1 }
 0x241   : > { %v1234_v18 = vadd.f32 %v4908_v28, %v1233_v17  ;;  %v4067_v22 = vpop.f32.mrb[5].mxu1 }
 0x242   : > { %v1236_v36 = vpop.f32.mrb[6].mxu1 }
 0x243   : > { %v1237_v39 = vadd.f32 %v4908_v28, %v1236_v36  ;;  %v4068_v15 = vpop.f32.mrb[7].mxu1  ;;  %v1307_v33 = vmax.f32 %v1234_v18, 0.0 }
 0x245   : > { %v1308_v25 = vmax.f32 %v1237_v39, 0.0 }
 0x247   : > { %v5161_v59 = vpack.c.bf16 %v1308_v25, %v1307_v33 }
 0x249   : > { %1854 = vmatmul.mubr.bf16.gmra.mrb[72].mxu1 %v5161_v59  ;;  %2055 = vmatmul.mubr.bf16.gmra.mrb[76].mxu0 %v5161_v59 }
 0x24a   : > { %1863 = vmatprep.mubr.bf16.mxu1 %v4311_v6  ;;  %2064 = vmatprep.mubr.bf16.mxu0 %v4311_v6 }
 0x253   : > { %v1241_v26 = vpop.f32.mrb[8].mxu1 }
 0x254   : > { %v1242_v46 = vadd.f32 %v4908_v28, %v1241_v26  ;;  %v4071_v47 = vpop.f32.mrb[9].mxu1 }
 0x255   : > { %v1244_v48 = vpop.f32.mrb[10].mxu1 }
 0x256   : > { %v1245_v49 = vadd.f32 %v4908_v28, %v1244_v48  ;;  %v4072_v32 = vpop.f32.mrb[11].mxu1  ;;  %v1309_v11 = vmax.f32 %v1242_v46, 0.0 }
 0x258   : > { %v1310_v50 = vmax.f32 %v1245_v49, 0.0 }
 0x25a   : > { %v5169_v29 = vpack.c.bf16 %v1310_v50, %v1309_v11 }
 0x25c   : > { %1864 = vmatmul.mubr.bf16.gmra.mrb[76].mxu1 %v5169_v29  ;;  %2065 = vmatmul.mubr.bf16.gmra.mrb[80].mxu0 %v5169_v29 }
 0x25d   : > { %1873 = vmatprep.mubr.bf16.mxu1 %v4311_v6  ;;  %2074 = vmatprep.mubr.bf16.mxu0 %v4311_v6 }
 0x266   : > { %v1249_v8 = vpop.f32.mrb[12].mxu1 }
 0x267   : > { %v1250_v23 = vadd.f32 %v4908_v28, %v1249_v8  ;;  %v4075_v52 = vpop.f32.mrb[13].mxu1 }
 0x268   : > { %v1252_v27 = vpop.f32.mrb[14].mxu1  ;;  %v1956_v34 = vpop.f32.mrb[36].mxu0 }
 0x269   : > { %v1253_v53 = vadd.f32 %v4908_v28, %v1252_v27  ;;  %v4076_v55 = vpop.f32.mrb[15].mxu1  ;;  %v1958_v35 = vpop.f32.mrb[37].mxu0  ;;  %v1311_v56 = vmax.f32 %v1250_v23, 0.0 }
 0x26a   : > { %v1960_v42 = vpop.f32.mrb[38].mxu0 }
 0x26b   : > { %v1312_v58 = vmax.f32 %v1253_v53, 0.0  ;;  %v3008_v61 = vmax.f32 %v1956_v34, %v1960_v42  ;;  %v1962_v41 = vpop.f32.mrb[39].mxu0 }
 0x26c   : > { %v3046_v62 = vmax.f32 %v1958_v35, %v1962_v41 }
 0x26d   : > { %v5177_v43 = vpack.c.bf16 %v1312_v58, %v1311_v56 }
 0x26f   : > { %1874 = vmatmul.mubr.bf16.gmra.mrb[80].mxu1 %v5177_v43  ;;  %2075 = vmatmul.mubr.bf16.gmra.mrb[84].mxu0 %v5177_v43 }
 0x270   : > { %1883 = vmatprep.mubr.bf16.mxu1 %v4311_v6  ;;  %2084 = vmatprep.mubr.bf16.mxu0 %v4311_v6 }
 0x271   : > { %v1966_v40 = vpop.f32.mrb[40].mxu0 }
 0x272   : > { %v3009_v44 = vmax.f32 %v3008_v61, %v1966_v40  ;;  %v1968_v20 = vpop.f32.mrb[41].mxu0 }
 0x273   : > { %v3047_v3 = vmax.f32 %v3046_v62, %v1968_v20  ;;  %v1970_v2 = vpop.f32.mrb[42].mxu0 }
 0x274   : > { %v3010_v45 = vmax.f32 %v3009_v44, %v1970_v2  ;;  %v1972_v51 = vpop.f32.mrb[43].mxu0 }
 0x275   : > { %v3048_v4 = vmax.f32 %v3047_v3, %v1972_v51 }
 0x279   : > { %v1257_v7 = vpop.f32.mrb[16].mxu1 }
 0x27a   : > { %v1258_v31 = vadd.f32 %v4908_v28, %v1257_v7  ;;  %v4079_v9 = vpop.f32.mrb[17].mxu1 }
 0x27b   : > { %v1260_v10 = vpop.f32.mrb[18].mxu1 }
 0x27c   : > { %v1261_v12 = vadd.f32 %v4908_v28, %v1260_v10  ;;  %v4080_v13 = vpop.f32.mrb[19].mxu1  ;;  %v1313_v30 = vmax.f32 %v1258_v31, 0.0 }
 0x27e   : > { %v1314_v1 = vmax.f32 %v1261_v12, 0.0 }
 0x280   : > { %v5185_v14 = vpack.c.bf16 %v1314_v1, %v1313_v30 }
 0x282   : > { %1884 = vmatmul.mubr.bf16.gmra.mrb[84].mxu1 %v5185_v14  ;;  %2085 = vmatmul.mubr.bf16.gmra.mrb[88].mxu0 %v5185_v14 }
 0x283   : > { %1893 = vmatprep.mubr.bf16.mxu1 %v4311_v6  ;;  %2094 = vmatprep.mubr.bf16.mxu0 %v4311_v6 }
 0x284   : > { %v1976_v24 = vpop.f32.mrb[44].mxu0 }
 0x285   : > { %v3011_v38 = vmax.f32 %v3010_v45, %v1976_v24  ;;  %v1978_v17 = vpop.f32.mrb[45].mxu0 }
 0x286   : > { %v3049_v18 = vmax.f32 %v3048_v4, %v1978_v17  ;;  %v1980_v22 = vpop.f32.mrb[46].mxu0 }
 0x287   : > { %v3012_v36 = vmax.f32 %v3011_v38, %v1980_v22  ;;  %v1982_v39 = vpop.f32.mrb[47].mxu0 }
 0x288   : > { %v3050_v15 = vmax.f32 %v3049_v18, %v1982_v39 }
 0x28c   : > { %v1265_v33 = vpop.f32.mrb[20].mxu1 }
 0x28d   : > { %v1266_v25 = vadd.f32 %v4908_v28, %v1265_v33  ;;  %v4083_v26 = vpop.f32.mrb[21].mxu1 }
 0x28e   : > { %v1268_v46 = vpop.f32.mrb[22].mxu1 }
 0x28f   : > { %v1269_v47 = vadd.f32 %v4908_v28, %v1268_v46  ;;  %v4084_v48 = vpop.f32.mrb[23].mxu1  ;;  %v1315_v49 = vmax.f32 %v1266_v25, 0.0 }
 0x291   : > { %v1316_v32 = vmax.f32 %v1269_v47, 0.0 }
 0x293   : > { %v5193_v11 = vpack.c.bf16 %v1316_v32, %v1315_v49 }
 0x295   : > { %1894 = vmatmul.mubr.bf16.gmra.mrb[88].mxu1 %v5193_v11  ;;  %2095 = vmatmul.mubr.bf16.gmra.mrb[92].mxu0 %v5193_v11 }
 0x296   : > { %1903 = vmatprep.mubr.bf16.mxu1 %v4311_v6  ;;  %2104 = vmatprep.mubr.bf16.mxu0 %v4311_v6 }
 0x297   : > { %v1986_v50 = vpop.f32.mrb[48].mxu0 }
 0x298   : > { %v3013_v8 = vmax.f32 %v3012_v36, %v1986_v50  ;;  %v1988_v23 = vpop.f32.mrb[49].mxu0 }
 0x299   : > { %v3051_v52 = vmax.f32 %v3050_v15, %v1988_v23  ;;  %v1990_v27 = vpop.f32.mrb[50].mxu0 }
 0x29a   : > { %v3014_v34 = vmax.f32 %v3013_v8, %v1990_v27  ;;  %v1992_v53 = vpop.f32.mrb[51].mxu0 }
 0x29b   : > { %v3052_v55 = vmax.f32 %v3051_v52, %v1992_v53 }
 0x29f   : > { %v1273_v35 = vpop.f32.mrb[24].mxu1 }
 0x2a0   : > { %v1274_v42 = vadd.f32 %v4908_v28, %v1273_v35  ;;  %v4087_v56 = vpop.f32.mrb[25].mxu1 }
 0x2a1   : > { %v1276_v58 = vpop.f32.mrb[26].mxu1 }
 0x2a2   : > { %v1277_v61 = vadd.f32 %v4908_v28, %v1276_v58  ;;  %v4088_v41 = vpop.f32.mrb[27].mxu1  ;;  %v1317_v62 = vmax.f32 %v1274_v42, 0.0 }
 0x2a4   : > { %v1318_v40 = vmax.f32 %v1277_v61, 0.0 }
 0x2a6   : > { %v5201_v44 = vpack.c.bf16 %v1318_v40, %v1317_v62 }
 0x2a8   : > { %1904 = vmatmul.mubr.bf16.gmra.mrb[92].mxu1 %v5201_v44  ;;  %2105 = vmatmul.mubr.bf16.gmra.mrb[96].mxu0 %v5201_v44 }
 0x2a9   : > { %v1281_v20 = vpop.f32.mrb[28].mxu1  ;;  %1913 = vmatprep.mubr.bf16.mxu1 %v4311_v6  ;;  %2114 = vmatprep.mubr.bf16.mxu0 %v4311_v6 }
 0x2aa   : > { %v1282_v3 = vadd.f32 %v4908_v28, %v1281_v20  ;;  %v4091_v2 = vpop.f32.mrb[29].mxu1  ;;  %v1996_v45 = vpop.f32.mrb[52].mxu0 }
 0x2ab   : > { %v3015_v51 = vmax.f32 %v3014_v34, %v1996_v45  ;;  %v1284_v4 = vpop.f32.mrb[30].mxu1  ;;  %v1998_v7 = vpop.f32.mrb[53].mxu0 }
 0x2ac   : > { %v1319_v31 = vmax.f32 %v1282_v3, 0.0  ;;  %v3053_v9 = vmax.f32 %v3052_v55, %v1998_v7  ;;  %v4092_v10 = vpop.f32.mrb[31].mxu1  ;;  %v2000_v12 = vpop.f32.mrb[54].mxu0 }
 0x2ad   : > { %v3016_v13 = vmax.f32 %v3015_v51, %v2000_v12  ;;  %v2002_v30 = vpop.f32.mrb[55].mxu0 }
 0x2ae   : > { %v5208_v1 = vpack.c.bf16 %v1319_v31, %v1319_v31  ;;  %v3054_v24 = vmax.f32 %v3053_v9, %v2002_v30 }
 0x2b0   : > { %1914 = vmatmul.mubr.bf16.gmra.mrb[96].mxu1 %v5208_v1  ;;  %2115 = vmatmul.mubr.bf16.gmra.mrb[100].mxu0 %v5208_v1 }
 0x2b1   : > { %v1755_v38 = vpop.f32.mrb[32].mxu1  ;;  %2155 = vmatprep.mubr.bf16.mxu1 %v4311_v6  ;;  %2356 = vmatprep.mubr.bf16.mxu0 %v4311_v6 }
 0x2b2   : > { %v1757_v28 = vpop.f32.mrb[33].mxu1 }
 0x2b3   : > { %v1759_v17 = vpop.f32.mrb[34].mxu1 }
 0x2b4   : > { %v2932_v18 = vmax.f32 %v1755_v38, %v1759_v17  ;;  %v1761_v22 = vpop.f32.mrb[35].mxu1 }
 0x2b5   : > { %v2970_v36 = vmax.f32 %v1757_v28, %v1761_v22 }
 0x2b8   : > { %2156 = vmatmul.mubr.bf16.vlgmr.msra.gmra.mrb[100].mxu1 %v4914_v21  ;;  %2357 = vmatmul.mubr.bf16.vlgmr.msra.gmra.mrb[104].mxu0 %v4914_v21 }
 0x2b9   : > { %v1765_v39 = vpop.f32.mrb[36].mxu1  ;;  %2165 = vmatprep.mubr.bf16.mxu1 %v4311_v6  ;;  %2366 = vmatprep.mubr.bf16.mxu0 %v4311_v6 }
 0x2ba   : > { %v2933_v15 = vmax.f32 %v2932_v18, %v1765_v39  ;;  %v1767_v33 = vpop.f32.mrb[37].mxu1 }
 0x2bb   : > { %v2971_v25 = vmax.f32 %v2970_v36, %v1767_v33  ;;  %v1769_v26 = vpop.f32.mrb[38].mxu1 }
 0x2bc   : > { %v2934_v46 = vmax.f32 %v2933_v15, %v1769_v26  ;;  %v1771_v47 = vpop.f32.mrb[39].mxu1 }
 0x2bd   : > { %v2972_v48 = vmax.f32 %v2971_v25, %v1771_v47  ;;  %v2006_v49 = vpop.f32.mrb[56].mxu0 }
 0x2be   : > { %v3017_v32 = vmax.f32 %v3016_v13, %v2006_v49  ;;  %v2008_v50 = vpop.f32.mrb[57].mxu0 }
 0x2bf   : > { %v3055_v8 = vmax.f32 %v3054_v24, %v2008_v50  ;;  %v2010_v23 = vpop.f32.mrb[58].mxu0 }
 0x2c0   : > { %v3018_v52 = vmax.f32 %v3017_v32, %v2010_v23  ;;  %v2012_v27 = vpop.f32.mrb[59].mxu0  ;;  %2166 = vmatmul.mubr.bf16.gmra.mrb[104].mxu1 %v4929_v60  ;;  %2367 = vmatmul.mubr.bf16.gmra.mrb[108].mxu0 %v4929_v60 }
 0x2c1   : > { %v3056_v21 = vmax.f32 %v3055_v8, %v2012_v27  ;;  %v1775_v34 = vpop.f32.mrb[40].mxu1  ;;  %2175 = vmatprep.mubr.bf16.mxu1 %v4311_v6  ;;  %2376 = vmatprep.mubr.bf16.mxu0 %v4311_v6 }
 0x2c2   : > { %v2935_v53 = vmax.f32 %v2934_v46, %v1775_v34  ;;  %v1777_v55 = vpop.f32.mrb[41].mxu1 }
 0x2c3   : > { %v2973_v35 = vmax.f32 %v2972_v48, %v1777_v55  ;;  %v1779_v42 = vpop.f32.mrb[42].mxu1 }
 0x2c4   : > { %v2936_v56 = vmax.f32 %v2935_v53, %v1779_v42  ;;  %v1781_v58 = vpop.f32.mrb[43].mxu1 }
 0x2c5   : > { %v2974_v61 = vmax.f32 %v2973_v35, %v1781_v58 }
 0x2c8   : > { %2176 = vmatmul.mubr.bf16.gmra.mrb[108].mxu1 %v4961_v19  ;;  %2377 = vmatmul.mubr.bf16.gmra.mrb[112].mxu0 %v4961_v19 }
 0x2c9   : > { %v1785_v41 = vpop.f32.mrb[44].mxu1  ;;  %2185 = vmatprep.mubr.bf16.mxu1 %v4311_v6  ;;  %2386 = vmatprep.mubr.bf16.mxu0 %v4311_v6 }
 0x2ca   : > { %v2937_v60 = vmax.f32 %v2936_v56, %v1785_v41  ;;  %v1787_v62 = vpop.f32.mrb[45].mxu1 }
 0x2cb   : > { %v2975_v40 = vmax.f32 %v2974_v61, %v1787_v62  ;;  %v1789_v20 = vpop.f32.mrb[46].mxu1 }
 0x2cc   : > { %v2938_v3 = vmax.f32 %v2937_v60, %v1789_v20  ;;  %v1791_v2 = vpop.f32.mrb[47].mxu1 }
 0x2cd   : > { %v2976_v45 = vmax.f32 %v2975_v40, %v1791_v2 }
 0x2d0   : > { %v2016_v51 = vpop.f32.mrb[60].mxu0  ;;  %2186 = vmatmul.mubr.bf16.gmra.mrb[112].mxu1 %v5001_v57  ;;  %2387 = vmatmul.mubr.bf16.gmra.mrb[116].mxu0 %v5001_v57 }
 0x2d1   : > { %v3019_v4 = vmax.f32 %v3018_v52, %v2016_v51  ;;  %v1795_v7 = vpop.f32.mrb[48].mxu1  ;;  %v2018_v19 = vpop.f32.mrb[61].mxu0  ;;  %2195 = vmatprep.mubr.bf16.mxu1 %v4311_v6  ;;  %2396 = vmatprep.mubr.bf16.mxu0 %v4311_v6 }
 0x2d2   : > { %v2939_v31 = vmax.f32 %v2938_v3, %v1795_v7  ;;  %v3057_v9 = vmax.f32 %v3056_v21, %v2018_v19  ;;  %v1797_v10 = vpop.f32.mrb[49].mxu1  ;;  %v2020_v12 = vpop.f32.mrb[62].mxu0 }
 0x2d3   : > { %v2977_v13 = vmax.f32 %v2976_v45, %v1797_v10  ;;  %v3020_v30 = vmax.f32 %v3019_v4, %v2020_v12  ;;  %v1799_v24 = vpop.f32.mrb[50].mxu1  ;;  %v2022_v38 = vpop.f32.mrb[63].mxu0 }
 0x2d4   : > { %v2940_v28 = vmax.f32 %v2939_v31, %v1799_v24  ;;  %v3058_v17 = vmax.f32 %v3057_v9, %v2022_v38  ;;  %v1801_v18 = vpop.f32.mrb[51].mxu1 }
 0x2d5   : > { %v2978_v22 = vmax.f32 %v2977_v13, %v1801_v18 }
 0x2d8   : > { %2196 = vmatmul.mubr.bf16.gmra.mrb[116].mxu1 %v5029_v0  ;;  %2397 = vmatmul.mubr.bf16.gmra.mrb[120].mxu0 %v5029_v0 }
 0x2d9   : > { %v1805_v57 = vpop.f32.mrb[52].mxu1  ;;  %2205 = vmatprep.mubr.bf16.mxu1 %v4311_v6  ;;  %2406 = vmatprep.mubr.bf16.mxu0 %v4311_v6 }
 0x2da   : > { %v2941_v36 = vmax.f32 %v2940_v28, %v1805_v57  ;;  %v1807_v39 = vpop.f32.mrb[53].mxu1 }
 0x2db   : > { %v2979_v15 = vmax.f32 %v2978_v22, %v1807_v39  ;;  %v1809_v33 = vpop.f32.mrb[54].mxu1 }
 0x2dc   : > { %v2942_v25 = vmax.f32 %v2941_v36, %v1809_v33  ;;  %v1811_v26 = vpop.f32.mrb[55].mxu1 }
 0x2dd   : > { %v2980_v46 = vmax.f32 %v2979_v15, %v1811_v26 }
 0x2e0   : > { %2206 = vmatmul.mubr.bf16.gmra.mrb[120].mxu1 %v5067_v5  ;;  %2407 = vmatmul.mubr.bf16.gmra.mrb[124].mxu0 %v5067_v5 }
 0x2e1   : > { %v1815_v47 = vpop.f32.mrb[56].mxu1  ;;  %2215 = vmatprep.mubr.bf16.mxu1 %v4311_v6  ;;  %2416 = vmatprep.mubr.bf16.mxu0 %v4311_v6 }
 0x2e2   : > { %v2943_v0 = vmax.f32 %v2942_v25, %v1815_v47  ;;  %v1817_v48 = vpop.f32.mrb[57].mxu1 }
 0x2e3   : > { %v2981_v49 = vmax.f32 %v2980_v46, %v1817_v48  ;;  %v1819_v32 = vpop.f32.mrb[58].mxu1  ;;  %v2026_v50 = vpop.f32.mrb[64].mxu0 }
 0x2e4   : > { %v2944_v8 = vmax.f32 %v2943_v0, %v1819_v32  ;;  %v3021_v23 = vmax.f32 %v3020_v30, %v2026_v50  ;;  %v1821_v52 = vpop.f32.mrb[59].mxu1  ;;  %v2028_v27 = vpop.f32.mrb[65].mxu0 }
 0x2e5   : > { %v2982_v21 = vmax.f32 %v2981_v49, %v1821_v52  ;;  %v3059_v34 = vmax.f32 %v3058_v17, %v2028_v27  ;;  %v2030_v53 = vpop.f32.mrb[66].mxu0 }
 0x2e6   : > { %v3022_v55 = vmax.f32 %v3021_v23, %v2030_v53  ;;  %v2032_v35 = vpop.f32.mrb[67].mxu0 }
 0x2e7   : > { %v3060_v5 = vmax.f32 %v3059_v34, %v2032_v35 }
 0x2e8   : > { %2216 = vmatmul.mubr.bf16.gmra.mrb[124].mxu1 %v5089_v37  ;;  %2417 = vmatmul.mubr.bf16.gmra.mrb[128].mxu0 %v5089_v37 }
 0x2e9   : > { %v1825_v42 = vpop.f32.mrb[60].mxu1  ;;  %2225 = vmatprep.mubr.bf16.mxu1 %v4311_v6  ;;  %2426 = vmatprep.mubr.bf16.mxu0 %v4311_v6 }
 0x2ea   : > { %v2945_v56 = vmax.f32 %v2944_v8, %v1825_v42  ;;  %v1827_v58 = vpop.f32.mrb[61].mxu1 }
 0x2eb   : > { %v2983_v61 = vmax.f32 %v2982_v21, %v1827_v58  ;;  %v1829_v41 = vpop.f32.mrb[62].mxu1 }
 0x2ec   : > { %v2946_v60 = vmax.f32 %v2945_v56, %v1829_v41  ;;  %v1831_v62 = vpop.f32.mrb[63].mxu1 }
 0x2ed   : > { %v2984_v40 = vmax.f32 %v2983_v61, %v1831_v62 }
 0x2f0   : > { %2226 = vmatmul.mubr.bf16.gmra.mrb[128].mxu1 %v5111_v54  ;;  %2427 = vmatmul.mubr.bf16.gmra.mrb[132].mxu0 %v5111_v54 }
 0x2f1   : > { %2235 = vmatprep.mubr.bf16.mxu1 %v4311_v6  ;;  %2436 = vmatprep.mubr.bf16.mxu0 %v4311_v6 }
 0x2f6   : > { %v1835_v37 = vpop.f32.mrb[64].mxu1  ;;  %v2036_v20 = vpop.f32.mrb[68].mxu0 }
 0x2f7   : > { %v2947_v3 = vmax.f32 %v2946_v60, %v1835_v37  ;;  %v3023_v2 = vmax.f32 %v3022_v55, %v2036_v20  ;;  %v1837_v45 = vpop.f32.mrb[65].mxu1  ;;  %v2038_v51 = vpop.f32.mrb[69].mxu0 }
 0x2f8   : > { %v2985_v4 = vmax.f32 %v2984_v40, %v1837_v45  ;;  %v3061_v7 = vmax.f32 %v3060_v5, %v2038_v51  ;;  %v1839_v19 = vpop.f32.mrb[66].mxu1  ;;  %v2040_v31 = vpop.f32.mrb[70].mxu0  ;;  %2236 = vmatmul.mubr.bf16.gmra.mrb[132].mxu1 %v5133_v63  ;;  %2437 = vmatmul.mubr.bf16.gmra.mrb[136].mxu0 %v5133_v63 }
 0x2f9   : > { %v2948_v9 = vmax.f32 %v2947_v3, %v1839_v19  ;;  %v3024_v54 = vmax.f32 %v3023_v2, %v2040_v31  ;;  %v1841_v10 = vpop.f32.mrb[67].mxu1  ;;  %v2042_v12 = vpop.f32.mrb[71].mxu0  ;;  %2245 = vmatprep.mubr.bf16.mxu1 %v4311_v6  ;;  %2446 = vmatprep.mubr.bf16.mxu0 %v4311_v6 }
 0x2fa   : > { %v2986_v13 = vmax.f32 %v2985_v4, %v1841_v10  ;;  %v3062_v30 = vmax.f32 %v3061_v7, %v2042_v12 }
 0x300   : > { %2246 = vmatmul.mubr.bf16.gmra.mrb[136].mxu1 %v5153_v16  ;;  %2447 = vmatmul.mubr.bf16.gmra.mrb[140].mxu0 %v5153_v16 }
 0x301   : > { %2255 = vmatprep.mubr.bf16.mxu1 %v4311_v6  ;;  %2456 = vmatprep.mubr.bf16.mxu0 %v4311_v6 }
 0x308   : > { %2256 = vmatmul.mubr.bf16.gmra.mrb[140].mxu1 %v5161_v59  ;;  %2457 = vmatmul.mubr.bf16.gmra.mrb[144].mxu0 %v5161_v59 }
 0x309   : > { %v1845_v63 = vpop.f32.mrb[68].mxu1  ;;  %v2046_v24 = vpop.f32.mrb[72].mxu0  ;;  %2265 = vmatprep.mubr.bf16.mxu1 %v4311_v6  ;;  %2466 = vmatprep.mubr.bf16.mxu0 %v4311_v6 }
 0x30a   : > { %v2949_v38 = vmax.f32 %v2948_v9, %v1845_v63  ;;  %v3025_v28 = vmax.f32 %v3024_v54, %v2046_v24  ;;  %v1847_v17 = vpop.f32.mrb[69].mxu1  ;;  %v2048_v18 = vpop.f32.mrb[73].mxu0 }
 0x30b   : > { %v2987_v22 = vmax.f32 %v2986_v13, %v1847_v17  ;;  %v3063_v16 = vmax.f32 %v3062_v30, %v2048_v18  ;;  %v1849_v57 = vpop.f32.mrb[70].mxu1  ;;  %v2050_v36 = vpop.f32.mrb[74].mxu0 }
 0x30c   : > { %v2950_v39 = vmax.f32 %v2949_v38, %v1849_v57  ;;  %v3026_v15 = vmax.f32 %v3025_v28, %v2050_v36  ;;  %v1851_v33 = vpop.f32.mrb[71].mxu1  ;;  %v2052_v25 = vpop.f32.mrb[75].mxu0 }
 0x30d   : > { %v2988_v26 = vmax.f32 %v2987_v22, %v1851_v33  ;;  %v3064_v59 = vmax.f32 %v3063_v16, %v2052_v25 }
 0x310   : > { %2266 = vmatmul.mubr.bf16.gmra.mrb[144].mxu1 %v5169_v29  ;;  %2467 = vmatmul.mubr.bf16.gmra.mrb[148].mxu0 %v5169_v29 }
 0x311   : > { %2275 = vmatprep.mubr.bf16.mxu1 %v4311_v6  ;;  %2476 = vmatprep.mubr.bf16.mxu0 %v4311_v6 }
 0x318   : > { %2276 = vmatmul.mubr.bf16.gmra.mrb[148].mxu1 %v5177_v43  ;;  %2477 = vmatmul.mubr.bf16.gmra.mrb[152].mxu0 %v5177_v43 }
 0x319   : > { %2285 = vmatprep.mubr.bf16.mxu1 %v4311_v6  ;;  %2486 = vmatprep.mubr.bf16.mxu0 %v4311_v6 }
 0x31c   : > { %v1855_v46 = vpop.f32.mrb[72].mxu1  ;;  %v2056_v47 = vpop.f32.mrb[76].mxu0 }
 0x31d   : > { %v2951_v0 = vmax.f32 %v2950_v39, %v1855_v46  ;;  %v3027_v48 = vmax.f32 %v3026_v15, %v2056_v47  ;;  %v1857_v49 = vpop.f32.mrb[73].mxu1  ;;  %v2058_v32 = vpop.f32.mrb[77].mxu0 }
 0x31e   : > { %v2989_v50 = vmax.f32 %v2988_v26, %v1857_v49  ;;  %v3065_v29 = vmax.f32 %v3064_v59, %v2058_v32  ;;  %v1859_v8 = vpop.f32.mrb[74].mxu1  ;;  %v2060_v23 = vpop.f32.mrb[78].mxu0 }
 0x31f   : > { %v2952_v52 = vmax.f32 %v2951_v0, %v1859_v8  ;;  %v3028_v27 = vmax.f32 %v3027_v48, %v2060_v23  ;;  %v1861_v21 = vpop.f32.mrb[75].mxu1  ;;  %v2062_v34 = vpop.f32.mrb[79].mxu0 }
 0x320   : > { %v2990_v53 = vmax.f32 %v2989_v50, %v1861_v21  ;;  %v3066_v43 = vmax.f32 %v3065_v29, %v2062_v34  ;;  %2286 = vmatmul.mubr.bf16.gmra.mrb[152].mxu1 %v5185_v14  ;;  %2487 = vmatmul.mubr.bf16.gmra.mrb[156].mxu0 %v5185_v14 }
 0x321   : > { %2295 = vmatprep.mubr.bf16.mxu1 %v4311_v6  ;;  %2496 = vmatprep.mubr.bf16.mxu0 %v4311_v6 }
 0x328   : > { %2296 = vmatmul.mubr.bf16.gmra.mrb[156].mxu1 %v5193_v11  ;;  %2497 = vmatmul.mubr.bf16.gmra.mrb[160].mxu0 %v5193_v11 }
 0x329   : > { %2305 = vmatprep.mubr.bf16.mxu1 %v4311_v6  ;;  %2506 = vmatprep.mubr.bf16.mxu0 %v4311_v6 }
 0x32f   : > { %v1865_v55 = vpop.f32.mrb[76].mxu1  ;;  %v2066_v35 = vpop.f32.mrb[80].mxu0 }
 0x330   : > { %v2953_v5 = vmax.f32 %v2952_v52, %v1865_v55  ;;  %v3029_v42 = vmax.f32 %v3028_v27, %v2066_v35  ;;  %v1867_v56 = vpop.f32.mrb[77].mxu1  ;;  %v2068_v58 = vpop.f32.mrb[81].mxu0  ;;  %2306 = vmatmul.mubr.bf16.gmra.mrb[160].mxu1 %v5201_v44  ;;  %2507 = vmatmul.mubr.bf16.gmra.mrb[164].mxu0 %v5201_v44  ;;  %v2534_v55 = vlaneseq }
 0x331   : > { %v2991_v14 = vmax.f32 %v2990_v53, %v1867_v56  ;;  %v3067_v61 = vmax.f32 %v3066_v43, %v2068_v58  ;;  %v1869_v41 = vpop.f32.mrb[78].mxu1  ;;  %v2070_v60 = vpop.f32.mrb[82].mxu0  ;;  %2315 = vmatprep.mubr.bf16.mxu1 %v4311_v6  ;;  %2516 = vmatprep.mubr.bf16.mxu0 %v4311_v6 }
 0x332   : > { %v2954_v11 = vmax.f32 %v2953_v5, %v1869_v41  ;;  %v3030_v62 = vmax.f32 %v3029_v42, %v2070_v60  ;;  %v1871_v40 = vpop.f32.mrb[79].mxu1  ;;  %v2072_v37 = vpop.f32.mrb[83].mxu0  ;;  %v5280_v35 = vshrl.u32 %v2534_v55, 7 }
 0x333   : > { %v2992_v20 = vmax.f32 %v2991_v14, %v1871_v40  ;;  %v3068_v3 = vmax.f32 %v3067_v61, %v2072_v37 }
 0x334   : > { %v5283_v40 = vadd.s32 256, %v5280_v35 }
 0x336   : > { %vm2601_vm2 = vcmp.lt.s32.totalorder %v5283_v40, 260 }
 0x338   : > { %2316 = vmatmul.mubr.bf16.gmra.mrb[164].mxu1 %v5208_v1  ;;  %2517 = vmatmul.mubr.bf16.gmra.mrb[168].mxu0 %v5208_v1 }
 0x342   : > { %v1875_v2 = vpop.f32.mrb[80].mxu1  ;;  %v2076_v44 = vpop.f32.mrb[84].mxu0 }
 0x343   : > { %v2955_v45 = vmax.f32 %v2954_v11, %v1875_v2  ;;  %v3031_v51 = vmax.f32 %v3030_v62, %v2076_v44  ;;  %v1877_v4 = vpop.f32.mrb[81].mxu1  ;;  %v2078_v7 = vpop.f32.mrb[85].mxu0 }
 0x344   : > { %v2993_v19 = vmax.f32 %v2992_v20, %v1877_v4  ;;  %v3069_v31 = vmax.f32 %v3068_v3, %v2078_v7  ;;  %v1879_v9 = vpop.f32.mrb[82].mxu1  ;;  %v2080_v6 = vpop.f32.mrb[86].mxu0 }
 0x345   : > { %v2956_v54 = vmax.f32 %v2955_v45, %v1879_v9  ;;  %v3032_v10 = vmax.f32 %v3031_v51, %v2080_v6  ;;  %v1881_v12 = vpop.f32.mrb[83].mxu1  ;;  %v2082_v13 = vpop.f32.mrb[87].mxu0 }
 0x346   : > { %v2994_v30 = vmax.f32 %v2993_v19, %v1881_v12  ;;  %v3070_v63 = vmax.f32 %v3069_v31, %v2082_v13 }
 0x355   : > { %v1885_v24 = vpop.f32.mrb[84].mxu1  ;;  %v2086_v38 = vpop.f32.mrb[88].mxu0 }
 0x356   : > { %v2957_v28 = vmax.f32 %v2956_v54, %v1885_v24  ;;  %v3033_v1 = vmax.f32 %v3032_v10, %v2086_v38  ;;  %v1887_v17 = vpop.f32.mrb[85].mxu1  ;;  %v2088_v18 = vpop.f32.mrb[89].mxu0 }
 0x357   : > { %v2995_v22 = vmax.f32 %v2994_v30, %v1887_v17  ;;  %v3071_v16 = vmax.f32 %v3070_v63, %v2088_v18  ;;  %v1889_v57 = vpop.f32.mrb[86].mxu1  ;;  %v2090_v36 = vpop.f32.mrb[90].mxu0 }
 0x358   : > { %v2958_v39 = vmax.f32 %v2957_v28, %v1889_v57  ;;  %v3034_v15 = vmax.f32 %v3033_v1, %v2090_v36  ;;  %v1891_v33 = vpop.f32.mrb[87].mxu1  ;;  %v2092_v25 = vpop.f32.mrb[91].mxu0  ;;  %v4314_v57 = vmov 1966171168  }
 0x359   : > { %v2996_v26 = vmax.f32 %v2995_v22, %v1891_v33  ;;  %v3072_v59 = vmax.f32 %v3071_v16, %v2092_v25  ;;  %v3253_v36 = vunpack.c.l.s4 %v4314_v57 }
 0x368   : > { %v1895_v46 = vpop.f32.mrb[88].mxu1  ;;  %v2096_v47 = vpop.f32.mrb[92].mxu0 }
 0x369   : > { %v2959_v0 = vmax.f32 %v2958_v39, %v1895_v46  ;;  %v3035_v48 = vmax.f32 %v3034_v15, %v2096_v47  ;;  %v1897_v49 = vpop.f32.mrb[89].mxu1  ;;  %v2098_v32 = vpop.f32.mrb[93].mxu0 }
 0x36a   : > { %v2997_v50 = vmax.f32 %v2996_v26, %v1897_v49  ;;  %v3073_v29 = vmax.f32 %v3072_v59, %v2098_v32  ;;  %v1899_v8 = vpop.f32.mrb[90].mxu1  ;;  %v2100_v23 = vpop.f32.mrb[94].mxu0 }
 0x36b   : > { %v2960_v52 = vmax.f32 %v2959_v0, %v1899_v8  ;;  %v3036_v27 = vmax.f32 %v3035_v48, %v2100_v23  ;;  %v1901_v21 = vpop.f32.mrb[91].mxu1  ;;  %v2102_v34 = vpop.f32.mrb[95].mxu0 }
 0x36c   : > { %v2998_v53 = vmax.f32 %v2997_v50, %v1901_v21  ;;  %v3074_v43 = vmax.f32 %v3073_v29, %v2102_v34  ;;  %v3254_v50 = vunpack.c.0.s8 %v3253_v36 }
 0x37b   : > { %v1905_v5 = vpop.f32.mrb[92].mxu1  ;;  %v2106_v42 = vpop.f32.mrb[96].mxu0 }
 0x37c   : > { %v2961_v56 = vmax.f32 %v2960_v52, %v1905_v5  ;;  %v3037_v58 = vmax.f32 %v3036_v27, %v2106_v42  ;;  %v1907_v14 = vpop.f32.mrb[93].mxu1  ;;  %v2108_v61 = vpop.f32.mrb[97].mxu0 }
 0x37d   : > { %v2999_v41 = vmax.f32 %v2998_v53, %v1907_v14  ;;  %v3075_v60 = vmax.f32 %v3074_v43, %v2108_v61  ;;  %v1909_v11 = vpop.f32.mrb[94].mxu1  ;;  %v2110_v62 = vpop.f32.mrb[98].mxu0 }
 0x37e   : > { %v2962_v37 = vmax.f32 %v2961_v56, %v1909_v11  ;;  %v3038_v20 = vmax.f32 %v3037_v58, %v2110_v62  ;;  %v1911_v3 = vpop.f32.mrb[95].mxu1  ;;  %v2112_v2 = vpop.f32.mrb[99].mxu0 }
 0x37f   : > { %v3000_v44 = vmax.f32 %v2999_v41, %v1911_v3  ;;  %v3076_v45 = vmax.f32 %v3075_v60, %v2112_v2  ;;  %v5295_v60 = vsub.s32 %v3254_v50, %v5280_v35 }
 0x383   : > { %v1915_v51 = vpop.f32.mrb[96].mxu1  ;;  %v2116_v4 = vpop.f32.mrb[100].mxu0 }
 0x384   : > { %v2924_v7 = vsel %vm2601_vm2, %v1915_v51, -inf  ;;  %v2926_v19 = vsel %vm2601_vm2, %v2116_v4, -inf  ;;  %v1917_v31 = vpop.f32.mrb[97].mxu1  ;;  %v2118_v9 = vpop.f32.mrb[101].mxu0 }
 0x385   : > { %v2963_v6 = vmax.f32 %v2962_v37, %v2924_v7  ;;  %v3039_v54 = vmax.f32 %v3038_v20, %v2926_v19  ;;  %v2925_v10 = vsel %vm2601_vm2, %v1917_v31, -inf  ;;  %v2927_v12 = vsel %vm2601_vm2, %v2118_v9, -inf  ;;  %v1919_v13 = vpop.f32.mrb[98].mxu1  ;;  %v2120_v30 = vpop.f32.mrb[102].mxu0 }
 0x386   : > { %v3001_v63 = vmax.f32 %v3000_v44, %v2925_v10  ;;  %v3077_v24 = vmax.f32 %v3076_v45, %v2927_v12  ;;  %v1920_v38 = vpop.f32.mrb[99].mxu1  ;;  %v2121_v28 = vpop.f32.mrb[103].mxu0 }
 0x387   : > { %v2964_v1 = vrot.slane %v2963_v6, 4  ;;  %v3040_v17 = vrot.slane %v3039_v54, 4 }
 0x388   : > { %v3002_v18 = vrot.slane %v3001_v63, 4  ;;  %v3078_v22 = vrot.slane %v3077_v24, 4 }
 0x389   : > { %v2965_v16 = vmax.f32 %v2963_v6, %v2964_v1  ;;  %v3041_v39 = vmax.f32 %v3039_v54, %v3040_v17 }
 0x38a   : > { %v3003_v15 = vmax.f32 %v3001_v63, %v3002_v18  ;;  %v3079_v33 = vmax.f32 %v3077_v24, %v3078_v22 }
 0x38b   : > { %v2966_v25 = vrot.slane %v2965_v16, 2  ;;  %v3042_v26 = vrot.slane %v3041_v39, 2  ;;  %v2157_v59 = vpop.f32.mrb[100].mxu1  ;;  %v2358_v46 = vpop.f32.mrb[104].mxu0 }
 0x38c   : > { %v3004_v47 = vrot.slane %v3003_v15, 2  ;;  %v3080_v0 = vrot.slane %v3079_v33, 2  ;;  %v2159_v48 = vpop.f32.mrb[101].mxu1  ;;  %v2360_v49 = vpop.f32.mrb[105].mxu0 }
 0x38d   : > { %v2967_v32 = vmax.f32 %v2965_v16, %v2966_v25  ;;  %v3043_v29 = vmax.f32 %v3041_v39, %v3042_v26  ;;  %v2161_v8 = vpop.f32.mrb[102].mxu1  ;;  %v2362_v23 = vpop.f32.mrb[106].mxu0 }
 0x38e   : > { %v3005_v52 = vmax.f32 %v3003_v15, %v3004_v47  ;;  %v3081_v27 = vmax.f32 %v3079_v33, %v3080_v0  ;;  %v3084_v21 = vmax.f32 %v2157_v59, %v2161_v8  ;;  %v3160_v34 = vmax.f32 %v2358_v46, %v2362_v23  ;;  %v2163_v53 = vpop.f32.mrb[103].mxu1  ;;  %v2364_v43 = vpop.f32.mrb[107].mxu0 }
 0x38f   : > { %v2968_v55 = vrot.slane %v2967_v32, 1  ;;  %v3044_v5 = vrot.slane %v3043_v29, 1  ;;  %v3122_v42 = vmax.f32 %v2159_v48, %v2163_v53  ;;  %v3198_v56 = vmax.f32 %v2360_v49, %v2364_v43 }
 0x390   : > { %v3006_v58 = vrot.slane %v3005_v52, 1  ;;  %v3082_v14 = vrot.slane %v3081_v27, 1 }
 0x391   : > { %v2969_v61 = vmax.f32 %v2967_v32, %v2968_v55  ;;  %v3045_v41 = vmax.f32 %v3043_v29, %v3044_v5 }
 0x392   : > { %v3007_v11 = vmax.f32 %v3005_v52, %v3006_v58  ;;  %v3083_v62 = vmax.f32 %v3081_v27, %v3082_v14 }
 0x393   : > { %v2167_v37 = vpop.f32.mrb[104].mxu1  ;;  %v2368_v20 = vpop.f32.mrb[108].mxu0 }
 0x394   : > { %v3248_v3 = vcombine.low %v2969_v61, %v3007_v11  ;;  %v3249_v2 = vcombine.low %v3045_v41, %v3083_v62  ;;  %v3085_v44 = vmax.f32 %v3084_v21, %v2167_v37  ;;  %v3161_v45 = vmax.f32 %v3160_v34, %v2368_v20  ;;  %v2169_v51 = vpop.f32.mrb[105].mxu1  ;;  %v2370_v4 = vpop.f32.mrb[109].mxu0 }
 0x395   : > { %v3123_v7 = vmax.f32 %v3122_v42, %v2169_v51  ;;  %v3199_v19 = vmax.f32 %v3198_v56, %v2370_v4  ;;  %v2171_v31 = vpop.f32.mrb[106].mxu1  ;;  %v2372_v9 = vpop.f32.mrb[110].mxu0 }
 0x396   : > { %v3086_v6 = vmax.f32 %v3085_v44, %v2171_v31  ;;  %v3162_v54 = vmax.f32 %v3161_v45, %v2372_v9  ;;  %v2173_v10 = vpop.f32.mrb[107].mxu1  ;;  %v2374_v12 = vpop.f32.mrb[111].mxu0  ;;  %v5298_v35 = vrot.slane %v3248_v3, %v5295_v60  ;;  %v5301_v13 = vrot.slane %v3249_v2, %v5295_v60 }
 0x397   : > { %v3124_v30 = vmax.f32 %v3123_v7, %v2173_v10  ;;  %v3200_v63 = vmax.f32 %v3199_v19, %v2374_v12 }
 0x398   : > { %v3280_v24 = vcombine.low %v5298_v35, %v5301_v13 }
 0x39b   : > { %v2177_v38 = vpop.f32.mrb[108].mxu1  ;;  %v2378_v28 = vpop.f32.mrb[112].mxu0 }
 0x39c   : > { %v3087_v1 = vmax.f32 %v3086_v6, %v2177_v38  ;;  %v3163_v17 = vmax.f32 %v3162_v54, %v2378_v28  ;;  %v2179_v18 = vpop.f32.mrb[109].mxu1  ;;  %v2380_v22 = vpop.f32.mrb[113].mxu0 }
 0x39d   : > { %v3125_v16 = vmax.f32 %v3124_v30, %v2179_v18  ;;  %v3201_v57 = vmax.f32 %v3200_v63, %v2380_v22  ;;  %v2181_v36 = vpop.f32.mrb[110].mxu1  ;;  %v2382_v39 = vpop.f32.mrb[114].mxu0 }
 0x39e   : > { %v3088_v15 = vmax.f32 %v3087_v1, %v2181_v36  ;;  %v3164_v33 = vmax.f32 %v3163_v17, %v2382_v39  ;;  %v2183_v25 = vpop.f32.mrb[111].mxu1  ;;  %v2384_v26 = vpop.f32.mrb[115].mxu0 }
 0x39f   : > { %v3126_v59 = vmax.f32 %v3125_v16, %v2183_v25  ;;  %v3202_v46 = vmax.f32 %v3201_v57, %v2384_v26 }
 0x3a3   : > { %v2187_v47 = vpop.f32.mrb[112].mxu1  ;;  %v2388_v0 = vpop.f32.mrb[116].mxu0 }
 0x3a4   : > { %v3089_v48 = vmax.f32 %v3088_v15, %v2187_v47  ;;  %v3165_v49 = vmax.f32 %v3164_v33, %v2388_v0  ;;  %v2189_v32 = vpop.f32.mrb[113].mxu1  ;;  %v2390_v50 = vpop.f32.mrb[117].mxu0 }
 0x3a5   : > { %v3127_v29 = vmax.f32 %v3126_v59, %v2189_v32  ;;  %v3203_v8 = vmax.f32 %v3202_v46, %v2390_v50  ;;  %v2191_v23 = vpop.f32.mrb[114].mxu1  ;;  %v2392_v52 = vpop.f32.mrb[118].mxu0 }
 0x3a6   : > { %v3090_v27 = vmax.f32 %v3089_v48, %v2191_v23  ;;  %v3166_v21 = vmax.f32 %v3165_v49, %v2392_v52  ;;  %v2193_v34 = vpop.f32.mrb[115].mxu1  ;;  %v2394_v53 = vpop.f32.mrb[119].mxu0 }
 0x3a7   : > { %v3128_v43 = vmax.f32 %v3127_v29, %v2193_v34  ;;  %v3204_v55 = vmax.f32 %v3203_v8, %v2394_v53 }
 0x3ab   : > { %v2197_v5 = vpop.f32.mrb[116].mxu1  ;;  %v2398_v42 = vpop.f32.mrb[120].mxu0 }
 0x3ac   : > { %v3091_v56 = vmax.f32 %v3090_v27, %v2197_v5  ;;  %v3167_v58 = vmax.f32 %v3166_v21, %v2398_v42  ;;  %v2199_v14 = vpop.f32.mrb[117].mxu1  ;;  %v2400_v61 = vpop.f32.mrb[121].mxu0 }
 0x3ad   : > { %v3129_v41 = vmax.f32 %v3128_v43, %v2199_v14  ;;  %v3205_v11 = vmax.f32 %v3204_v55, %v2400_v61  ;;  %v2201_v62 = vpop.f32.mrb[118].mxu1  ;;  %v2402_v37 = vpop.f32.mrb[122].mxu0 }
 0x3ae   : > { %v3092_v20 = vmax.f32 %v3091_v56, %v2201_v62  ;;  %v3168_v3 = vmax.f32 %v3167_v58, %v2402_v37  ;;  %v2203_v2 = vpop.f32.mrb[119].mxu1  ;;  %v2404_v44 = vpop.f32.mrb[123].mxu0 }
 0x3af   : > { %v3130_v45 = vmax.f32 %v3129_v41, %v2203_v2  ;;  %v3206_v51 = vmax.f32 %v3205_v11, %v2404_v44 }
 0x3b3   : > { %v2207_v4 = vpop.f32.mrb[120].mxu1  ;;  %v2408_v7 = vpop.f32.mrb[124].mxu0 }
 0x3b4   : > { %v3093_v19 = vmax.f32 %v3092_v20, %v2207_v4  ;;  %v3169_v31 = vmax.f32 %v3168_v3, %v2408_v7  ;;  %v2209_v9 = vpop.f32.mrb[121].mxu1  ;;  %v2410_v6 = vpop.f32.mrb[125].mxu0 }
 0x3b5   : > { %v3131_v54 = vmax.f32 %v3130_v45, %v2209_v9  ;;  %v3207_v10 = vmax.f32 %v3206_v51, %v2410_v6  ;;  %v2211_v12 = vpop.f32.mrb[122].mxu1  ;;  %v2412_v30 = vpop.f32.mrb[126].mxu0 }
 0x3b6   : > { %v3094_v63 = vmax.f32 %v3093_v19, %v2211_v12  ;;  %v3170_v38 = vmax.f32 %v3169_v31, %v2412_v30  ;;  %v2213_v28 = vpop.f32.mrb[123].mxu1  ;;  %v2414_v1 = vpop.f32.mrb[127].mxu0 }
 0x3b7   : > { %v3132_v17 = vmax.f32 %v3131_v54, %v2213_v28  ;;  %v3208_v18 = vmax.f32 %v3207_v10, %v2414_v1 }
 0x3bb   : > { %v2217_v22 = vpop.f32.mrb[124].mxu1  ;;  %v2418_v16 = vpop.f32.mrb[128].mxu0 }
 0x3bc   : > { %v3095_v57 = vmax.f32 %v3094_v63, %v2217_v22  ;;  %v3171_v36 = vmax.f32 %v3170_v38, %v2418_v16  ;;  %v2219_v39 = vpop.f32.mrb[125].mxu1  ;;  %v2420_v15 = vpop.f32.mrb[129].mxu0 }
 0x3bd   : > { %v3133_v33 = vmax.f32 %v3132_v17, %v2219_v39  ;;  %v3209_v25 = vmax.f32 %v3208_v18, %v2420_v15  ;;  %v2221_v26 = vpop.f32.mrb[126].mxu1  ;;  %v2422_v59 = vpop.f32.mrb[130].mxu0 }
 0x3be   : > { %v3096_v46 = vmax.f32 %v3095_v57, %v2221_v26  ;;  %v3172_v47 = vmax.f32 %v3171_v36, %v2422_v59  ;;  %v2223_v0 = vpop.f32.mrb[127].mxu1  ;;  %v2424_v48 = vpop.f32.mrb[131].mxu0 }
 0x3bf   : > { %v3134_v49 = vmax.f32 %v3133_v33, %v2223_v0  ;;  %v3210_v32 = vmax.f32 %v3209_v25, %v2424_v48 }
 0x3c3   : > { %v2227_v50 = vpop.f32.mrb[128].mxu1  ;;  %v2428_v29 = vpop.f32.mrb[132].mxu0 }
 0x3c4   : > { %v3097_v8 = vmax.f32 %v3096_v46, %v2227_v50  ;;  %v3173_v23 = vmax.f32 %v3172_v47, %v2428_v29  ;;  %v2229_v52 = vpop.f32.mrb[129].mxu1  ;;  %v2430_v27 = vpop.f32.mrb[133].mxu0 }
 0x3c5   : > { %v3135_v21 = vmax.f32 %v3134_v49, %v2229_v52  ;;  %v3211_v34 = vmax.f32 %v3210_v32, %v2430_v27  ;;  %v2231_v53 = vpop.f32.mrb[130].mxu1  ;;  %v2432_v43 = vpop.f32.mrb[134].mxu0 }
 0x3c6   : > { %v3098_v55 = vmax.f32 %v3097_v8, %v2231_v53  ;;  %v3174_v5 = vmax.f32 %v3173_v23, %v2432_v43  ;;  %v2233_v42 = vpop.f32.mrb[131].mxu1  ;;  %v2434_v56 = vpop.f32.mrb[135].mxu0 }
 0x3c7   : > { %v3136_v58 = vmax.f32 %v3135_v21, %v2233_v42  ;;  %v3212_v14 = vmax.f32 %v3211_v34, %v2434_v56 }
 0x3cb   : > { %v2237_v61 = vpop.f32.mrb[132].mxu1  ;;  %v2438_v41 = vpop.f32.mrb[136].mxu0 }
 0x3cc   : > { %v3099_v11 = vmax.f32 %v3098_v55, %v2237_v61  ;;  %v3175_v62 = vmax.f32 %v3174_v5, %v2438_v41  ;;  %v2239_v37 = vpop.f32.mrb[133].mxu1  ;;  %v2440_v20 = vpop.f32.mrb[137].mxu0 }
 0x3cd   : > { %v3137_v3 = vmax.f32 %v3136_v58, %v2239_v37  ;;  %v3213_v2 = vmax.f32 %v3212_v14, %v2440_v20  ;;  %v2241_v44 = vpop.f32.mrb[134].mxu1  ;;  %v2442_v45 = vpop.f32.mrb[138].mxu0 }
 0x3ce   : > { %v3100_v51 = vmax.f32 %v3099_v11, %v2241_v44  ;;  %v3176_v4 = vmax.f32 %v3175_v62, %v2442_v45  ;;  %v2243_v7 = vpop.f32.mrb[135].mxu1  ;;  %v2444_v19 = vpop.f32.mrb[139].mxu0 }
 0x3cf   : > { %v3138_v31 = vmax.f32 %v3137_v3, %v2243_v7  ;;  %v3214_v9 = vmax.f32 %v3213_v2, %v2444_v19 }
 0x3d3   : > { %v2247_v6 = vpop.f32.mrb[136].mxu1  ;;  %v2448_v54 = vpop.f32.mrb[140].mxu0 }
 0x3d4   : > { %v3101_v10 = vmax.f32 %v3100_v51, %v2247_v6  ;;  %v3177_v12 = vmax.f32 %v3176_v4, %v2448_v54  ;;  %v2249_v30 = vpop.f32.mrb[137].mxu1  ;;  %v2450_v63 = vpop.f32.mrb[141].mxu0 }
 0x3d5   : > { %v3139_v38 = vmax.f32 %v3138_v31, %v2249_v30  ;;  %v3215_v28 = vmax.f32 %v3214_v9, %v2450_v63  ;;  %v2251_v1 = vpop.f32.mrb[138].mxu1  ;;  %v2452_v17 = vpop.f32.mrb[142].mxu0 }
 0x3d6   : > { %v3102_v18 = vmax.f32 %v3101_v10, %v2251_v1  ;;  %v3178_v22 = vmax.f32 %v3177_v12, %v2452_v17  ;;  %v2253_v16 = vpop.f32.mrb[139].mxu1  ;;  %v2454_v57 = vpop.f32.mrb[143].mxu0 }
 0x3d7   : > { %v3140_v36 = vmax.f32 %v3139_v38, %v2253_v16  ;;  %v3216_v39 = vmax.f32 %v3215_v28, %v2454_v57 }
 0x3db   : > { %v2257_v15 = vpop.f32.mrb[140].mxu1  ;;  %v2458_v33 = vpop.f32.mrb[144].mxu0 }
 0x3dc   : > { %v3103_v25 = vmax.f32 %v3102_v18, %v2257_v15  ;;  %v3179_v26 = vmax.f32 %v3178_v22, %v2458_v33  ;;  %v2259_v59 = vpop.f32.mrb[141].mxu1  ;;  %v2460_v46 = vpop.f32.mrb[145].mxu0 }
 0x3dd   : > { %v3141_v47 = vmax.f32 %v3140_v36, %v2259_v59  ;;  %v3217_v0 = vmax.f32 %v3216_v39, %v2460_v46  ;;  %v2261_v48 = vpop.f32.mrb[142].mxu1  ;;  %v2462_v49 = vpop.f32.mrb[146].mxu0 }
 0x3de   : > { %v3104_v32 = vmax.f32 %v3103_v25, %v2261_v48  ;;  %v3180_v50 = vmax.f32 %v3179_v26, %v2462_v49  ;;  %v2263_v29 = vpop.f32.mrb[143].mxu1  ;;  %v2464_v8 = vpop.f32.mrb[147].mxu0 }
 0x3df   : > { %v3142_v23 = vmax.f32 %v3141_v47, %v2263_v29  ;;  %v3218_v52 = vmax.f32 %v3217_v0, %v2464_v8 }
 0x3e3   : > { %v2267_v27 = vpop.f32.mrb[144].mxu1  ;;  %v2468_v21 = vpop.f32.mrb[148].mxu0 }
 0x3e4   : > { %v3105_v34 = vmax.f32 %v3104_v32, %v2267_v27  ;;  %v3181_v53 = vmax.f32 %v3180_v50, %v2468_v21  ;;  %v2269_v43 = vpop.f32.mrb[145].mxu1  ;;  %v2470_v55 = vpop.f32.mrb[149].mxu0 }
 0x3e5   : > { %v3143_v5 = vmax.f32 %v3142_v23, %v2269_v43  ;;  %v3219_v42 = vmax.f32 %v3218_v52, %v2470_v55  ;;  %v2271_v56 = vpop.f32.mrb[146].mxu1  ;;  %v2472_v58 = vpop.f32.mrb[150].mxu0 }
 0x3e6   : > { %v3106_v14 = vmax.f32 %v3105_v34, %v2271_v56  ;;  %v3182_v61 = vmax.f32 %v3181_v53, %v2472_v58  ;;  %v2273_v41 = vpop.f32.mrb[147].mxu1  ;;  %v2474_v11 = vpop.f32.mrb[151].mxu0 }
 0x3e7   : > { %v3144_v62 = vmax.f32 %v3143_v5, %v2273_v41  ;;  %v3220_v37 = vmax.f32 %v3219_v42, %v2474_v11 }
 0x3eb   : > { %v2277_v20 = vpop.f32.mrb[148].mxu1  ;;  %v2478_v3 = vpop.f32.mrb[152].mxu0 }
 0x3ec   : > { %v3107_v2 = vmax.f32 %v3106_v14, %v2277_v20  ;;  %v3183_v44 = vmax.f32 %v3182_v61, %v2478_v3  ;;  %v2279_v45 = vpop.f32.mrb[149].mxu1  ;;  %v2480_v51 = vpop.f32.mrb[153].mxu0 }
 0x3ed   : > { %v3145_v4 = vmax.f32 %v3144_v62, %v2279_v45  ;;  %v3221_v7 = vmax.f32 %v3220_v37, %v2480_v51  ;;  %v2281_v19 = vpop.f32.mrb[150].mxu1  ;;  %v2482_v31 = vpop.f32.mrb[154].mxu0 }
 0x3ee   : > { %v3108_v9 = vmax.f32 %v3107_v2, %v2281_v19  ;;  %v3184_v6 = vmax.f32 %v3183_v44, %v2482_v31  ;;  %v2283_v54 = vpop.f32.mrb[151].mxu1  ;;  %v2484_v10 = vpop.f32.mrb[155].mxu0 }
 0x3ef   : > { %v3146_v12 = vmax.f32 %v3145_v4, %v2283_v54  ;;  %v3222_v30 = vmax.f32 %v3221_v7, %v2484_v10 }
 0x3f3   : > { %v2287_v63 = vpop.f32.mrb[152].mxu1  ;;  %v2488_v38 = vpop.f32.mrb[156].mxu0 }
 0x3f4   : > { %v3109_v28 = vmax.f32 %v3108_v9, %v2287_v63  ;;  %v3185_v1 = vmax.f32 %v3184_v6, %v2488_v38  ;;  %v2289_v17 = vpop.f32.mrb[153].mxu1  ;;  %v2490_v18 = vpop.f32.mrb[157].mxu0 }
 0x3f5   : > { %v3147_v22 = vmax.f32 %v3146_v12, %v2289_v17  ;;  %v3223_v16 = vmax.f32 %v3222_v30, %v2490_v18  ;;  %v2291_v57 = vpop.f32.mrb[154].mxu1  ;;  %v2492_v36 = vpop.f32.mrb[158].mxu0 }
 0x3f6   : > { %v3110_v39 = vmax.f32 %v3109_v28, %v2291_v57  ;;  %v3186_v15 = vmax.f32 %v3185_v1, %v2492_v36  ;;  %v2293_v33 = vpop.f32.mrb[155].mxu1  ;;  %v2494_v25 = vpop.f32.mrb[159].mxu0 }
 0x3f7   : > { %v3148_v26 = vmax.f32 %v3147_v22, %v2293_v33  ;;  %v3224_v59 = vmax.f32 %v3223_v16, %v2494_v25 }
 0x3fb   : > { %v2297_v46 = vpop.f32.mrb[156].mxu1  ;;  %v2498_v47 = vpop.f32.mrb[160].mxu0 }
 0x3fc   : > { %v3111_v0 = vmax.f32 %v3110_v39, %v2297_v46  ;;  %v3187_v48 = vmax.f32 %v3186_v15, %v2498_v47  ;;  %v2299_v49 = vpop.f32.mrb[157].mxu1  ;;  %v2500_v32 = vpop.f32.mrb[161].mxu0 }
 0x3fd   : > { %v3149_v50 = vmax.f32 %v3148_v26, %v2299_v49  ;;  %v3225_v29 = vmax.f32 %v3224_v59, %v2500_v32  ;;  %v2301_v8 = vpop.f32.mrb[158].mxu1  ;;  %v2502_v23 = vpop.f32.mrb[162].mxu0 }
 0x3fe   : > { %v3112_v52 = vmax.f32 %v3111_v0, %v2301_v8  ;;  %v3188_v27 = vmax.f32 %v3187_v48, %v2502_v23  ;;  %v2303_v21 = vpop.f32.mrb[159].mxu1  ;;  %v2504_v34 = vpop.f32.mrb[163].mxu0 }
 0x3ff   : > { %v3150_v53 = vmax.f32 %v3149_v50, %v2303_v21  ;;  %v3226_v43 = vmax.f32 %v3225_v29, %v2504_v34 }
 0x403   : > { %v2307_v55 = vpop.f32.mrb[160].mxu1  ;;  %v2508_v5 = vpop.f32.mrb[164].mxu0 }
 0x404   : > { %v3113_v42 = vmax.f32 %v3112_v52, %v2307_v55  ;;  %v3189_v56 = vmax.f32 %v3188_v27, %v2508_v5  ;;  %v2309_v58 = vpop.f32.mrb[161].mxu1  ;;  %v2510_v14 = vpop.f32.mrb[165].mxu0  ;;  %v3288_v5 = vrot.slane %v3280_v24, %v5295_v60 }
 0x405   : > { %v3151_v61 = vmax.f32 %v3150_v53, %v2309_v58  ;;  %v3227_v41 = vmax.f32 %v3226_v43, %v2510_v14  ;;  %v2311_v11 = vpop.f32.mrb[162].mxu1  ;;  %v2512_v62 = vpop.f32.mrb[166].mxu0 }
 0x406   : > { %v3114_v37 = vmax.f32 %v3113_v42, %v2311_v11  ;;  %v3190_v20 = vmax.f32 %v3189_v56, %v2512_v62  ;;  %v2313_v3 = vpop.f32.mrb[163].mxu1  ;;  %v2514_v2 = vpop.f32.mrb[167].mxu0 }
 0x407   : > { %v3152_v44 = vmax.f32 %v3151_v61, %v2313_v3  ;;  %v3228_v45 = vmax.f32 %v3227_v41, %v2514_v2 }
 0x40b   : > { %v2317_v51 = vpop.f32.mrb[164].mxu1  ;;  %v2518_v4 = vpop.f32.mrb[168].mxu0 }
 0x40c   : > { %v2928_v7 = vsel %vm2601_vm2, %v2317_v51, -inf  ;;  %v2930_v19 = vsel %vm2601_vm2, %v2518_v4, -inf  ;;  %v2319_v31 = vpop.f32.mrb[165].mxu1  ;;  %v2520_v9 = vpop.f32.mrb[169].mxu0 }
 0x40d   : > { %v3115_v6 = vmax.f32 %v3114_v37, %v2928_v7  ;;  %v3191_v54 = vmax.f32 %v3190_v20, %v2930_v19  ;;  %v2929_v10 = vsel %vm2601_vm2, %v2319_v31, -inf  ;;  %v2931_v12 = vsel %vm2601_vm2, %v2520_v9, -inf  ;;  %v2321_v30 = vpop.f32.mrb[166].mxu1  ;;  %v2522_v63 = vpop.f32.mrb[170].mxu0 }
 0x40e   : > { %v3153_v38 = vmax.f32 %v3152_v44, %v2929_v10  ;;  %v3229_v28 = vmax.f32 %v3228_v45, %v2931_v12  ;;  %v2322_v1 = vpop.f32.mrb[167].mxu1  ;;  %v2523_v17 = vpop.f32.mrb[171].mxu0 }
 0x40f   : > { %v3116_v18 = vrot.slane %v3115_v6, 4  ;;  %v3192_v22 = vrot.slane %v3191_v54, 4 }
 0x410   : > { %v3154_v16 = vrot.slane %v3153_v38, 4  ;;  %v3230_v57 = vrot.slane %v3229_v28, 4 }
 0x411   : > { %v3117_v36 = vmax.f32 %v3115_v6, %v3116_v18  ;;  %v3193_v39 = vmax.f32 %v3191_v54, %v3192_v22 }
 0x412   : > { %v3155_v15 = vmax.f32 %v3153_v38, %v3154_v16  ;;  %v3231_v33 = vmax.f32 %v3229_v28, %v3230_v57 }
 0x413   : > { %v3118_v25 = vrot.slane %v3117_v36, 2  ;;  %v3194_v26 = vrot.slane %v3193_v39, 2 }
 0x414   : > { %v3156_v59 = vrot.slane %v3155_v15, 2  ;;  %v3232_v40 = vrot.slane %v3231_v33, 2 }
 0x415   : > { %v3119_v46 = vmax.f32 %v3117_v36, %v3118_v25  ;;  %v3195_v47 = vmax.f32 %v3193_v39, %v3194_v26 }
 0x416   : > { %v3157_v0 = vmax.f32 %v3155_v15, %v3156_v59  ;;  %v3233_v48 = vmax.f32 %v3231_v33, %v3232_v40 }
 0x417   : > { %v3120_v49 = vrot.slane %v3119_v46, 1  ;;  %v3196_v32 = vrot.slane %v3195_v47, 1 }
 0x418   : > { %v3158_v50 = vrot.slane %v3157_v0, 1  ;;  %v3234_v29 = vrot.slane %v3233_v48, 1 }
 0x419   : > { %v3121_v8 = vmax.f32 %v3119_v46, %v3120_v49  ;;  %v3197_v23 = vmax.f32 %v3195_v47, %v3196_v32 }
 0x41a   : > { %v3159_v52 = vmax.f32 %v3157_v0, %v3158_v50  ;;  %v3235_v27 = vmax.f32 %v3233_v48, %v3234_v29 }
 0x41c   : > { %v3250_v21 = vcombine.low %v3121_v8, %v3159_v52  ;;  %v3251_v34 = vcombine.low %v3197_v23, %v3235_v27 }
 0x41e   : > { %v3272_v53 = vrot.slane %v3250_v21, %v5295_v60  ;;  %v3279_v43 = vrot.slane %v3251_v34, %v5295_v60 }
 0x420   : > { %v3281_v55 = vcombine.low %v3272_v53, %v3279_v43 }
 0x422   : > { %v3295_v42 = vrot.slane %v3281_v55, %v5295_v60 }
 0x424   : > { %v3296_v56 = vcombine.low %v3288_v5, %v3295_v42 }
 0x426   : > { %3298 = vst [vmem:[%s281_s19] sm:$0xff] %v3296_v56 }
 0x427   : > { %4242 = shalt.err (!%p4239_p5)
}
 0x428   : > { %s4243_s14 = scalar_lea.hbm %s5325_s30, 128  ;;  %s4247_s18 = scalar_lea.hbm %s5378_s6, 256 }
 0x429   : > { %p4244_p6 = scmp.ne.s32.totalorder %s5325_s30, %s4243_s14  ;;  %p4248_p10 = scmp.lt.u32.totalorder %s5325_s30, %s5378_s6 }
 0x42a   : > { %p4249_p11 = scmp.lt.u32.totalorder %s4247_s18, %s4243_s14  ;;  %p4251_p13 = scmp.lt.u32.totalorder %s4243_s14, %s5325_s30 }
 0x42b   : > { %p4245_p7 = pnand %p4244_p6, %p4391_p4 }
 0x42c   : > { %p4250_p12 = por %p4249_p11, %p4248_p10 }
 0x42d   : > { %p4246_p9 = pneg %p4245_p7 }
 0x42e   : > { %p4252_p0 = por %p4251_p13, %p4250_p12 }
 0x430   : > { %p4253_p1 = pnand %p4252_p0, %p4246_p9 }
 0x432   : > { %4256 = shalt.err (!%p4253_p1)
}
 0x433   : > { %4102 = dma.vmem_to_hbm [thread:$0]  (%p4391_p4), %s5327_s20, 128, %s5325_s30, %s3801_s24  }
 0x434 PF: > { %p4108_p2 = scmp.ge.s32.totalorder %s4307_s26, 2  ;;  %s3828_s27 = sand.u32 1, %s4287_s21  }
 0x435   : > { %s3829_s28 = scalar_lea.sflag [#allocation3], %s3828_s27 }
 0x436   : > { %p4105_p3 = pnand %p4108_p2, %p4398_p8 }
 0x438   : > { %4282 = dma.done.wait (!%p4105_p3), %s3829_s28, 128  }
 0x439   : > { %4284 = vsyncadd (!%p4105_p3), %s3829_s28, 4294967168  ;;  %s19_s26 = sadd.s32 1, %s4307_s26   ;;  %s5381_s21 = smov %s4291_s22 }
 0x43a   : > { %p16_p5 = scmp.ge.s32.totalorder %s19_s26, 4   ;;  %s5382_s22 = smov %s4295_s23 }
 0x43b   : > { %s5383_s23 = smov %s4404_s10  ;;  %s5384_s24 = smov %s4303_s25 }
 0x43c   : > { %s5385_s25 = smov %s5387_s29  ;;  %18 = sbr.rel (!%p16_p5) target bundleno = 4 (0x4), region = 103 }
 0x443   :  { %3834 = vsyncpa [#allocation3], 1 }
 0x444   :  { %3836 = vsyncpa [#allocation3 + $0x1], 1 }

</bundles_post_ra>
